<compile_context>
chip_gen: v5e
topology: v5e:2x2
jax: 0.10.0
libtpu: 0.0.40
codegen_flags: <defaults>
</compile_context>

<pallas_src>
import jax
import jax.numpy as jnp
from jax.experimental import pallas as pl
from jax.experimental.pallas import tpu as pltpu


def _integration_kernel(ab_ref, x_ref, c_ref, o_ref):
    # ab_ref: (2,) scalars [a, b] in SMEM; x_ref / c_ref / o_ref: (tm, N) VMEM tiles.
    a = ab_ref[0]
    b = ab_ref[1]
    o_ref[...] = jnp.cos(a * x_ref[...] + b * c_ref[...])


def integration_nn_forward(
    a,
    b,
    x,
    c,
    *,
    target_block_bytes=2 << 20,      # ~2 MiB per array-block (safe on v7x's 64 MiB VMEM)
    vmem_limit_bytes=32 << 20,       # 3 arrays x 2 buffers x 2 MiB = 12 MiB << 32 MiB
):
    """cos(a*x + b*c), elementwise, tiled as full-width row blocks."""
    assert x.shape == c.shape and x.dtype == c.dtype
    M, N = x.shape
    itemsize = jnp.dtype(x.dtype).itemsize

    # Pack both scalar parameters into one SMEM operand.
    ab = jnp.asarray([a, b], dtype=x.dtype)

    # Rows per block targeting ~target_block_bytes per array, multiple of 8 sublanes.
    rows = max(8, target_block_bytes // (N * itemsize))
    rows = (rows // 8) * 8

    if rows >= M:
        # Whole array fits one block: single grid step, block == full array
        # (no (8,128) divisibility constraint when block equals full dims).
        tm = M
        m_pad = M
    else:
        tm = rows
        m_pad = ((M + tm - 1) // tm) * tm  # pad rows so the grid divides evenly

    if m_pad != M:
        pad = ((0, m_pad - M), (0, 0))
        x = jnp.pad(x, pad)
        c = jnp.pad(c, pad)

    grid = (m_pad // tm,)
    tile_spec = pl.BlockSpec((tm, N), lambda i: (i, 0))
    smem_spec = pl.BlockSpec(memory_space=pltpu.SMEM)

    out = pl.pallas_call(
        _integration_kernel,
        out_shape=jax.ShapeDtypeStruct((m_pad, N), x.dtype),
        grid_spec=pltpu.PrefetchScalarGridSpec(
            num_scalar_prefetch=0,
            grid=grid,
            in_specs=[smem_spec, tile_spec, tile_spec],
            out_specs=tile_spec,
        ),
        compiler_params=pltpu.CompilerParams(
            dimension_semantics=("parallel",),
            vmem_limit_bytes=vmem_limit_bytes,
        ),
        cost_estimate=pl.CostEstimate(
            flops=3 * m_pad * N,             # two muls + one add per element
            transcendentals=m_pad * N,       # one cos per element
            bytes_accessed=3 * m_pad * N * itemsize,
        ),
    )(ab, x, c)

    return out[:M] if m_pad != M else out


if __name__ == "__main__":
    # Deterministic "parameters" (module __init__ args a, b).
    a = 1.25
    b = -0.75

    key = jax.random.PRNGKey(0)
    kx, kc, kx2, kc2 = jax.random.split(key, 4)

    # Small shape: collapses to a single whole-array block (grid of 1 step).
    M, N = 32, 256
    x = jax.random.normal(kx, (M, N), dtype=jnp.float32)
    c = jax.random.normal(kc, (M, N), dtype=jnp.float32)
    y = jax.block_until_ready(integration_nn_forward(a, b, x, c))
    y_ref = jnp.cos(a * x + b * c)
    assert jnp.allclose(y, y_ref, atol=1e-6, rtol=1e-6), "mismatch vs reference (small)"

    # Slightly larger, non-divisible row count: exercises the tiled + padded path.
    M2, N2 = 196, 384
    x2 = jax.random.normal(kx2, (M2, N2), dtype=jnp.float32)
    c2 = jax.random.normal(kc2, (M2, N2), dtype=jnp.float32)
    y2 = jax.block_until_ready(
        integration_nn_forward(a, b, x2, c2, target_block_bytes=64 * 1024)
    )
    y2_ref = jnp.cos(a * x2 + b * c2)
    assert jnp.allclose(y2, y2_ref, atol=1e-6, rtol=1e-6), "mismatch vs reference (tiled)"

    print("KERNEL_OK")
</pallas_src>

<mosaic_0001>
module attributes {stable_mosaic.version = 11 : i64} {
  func.func @_integration_kernel(%arg0: i32, %arg1: memref<2xf32, #tpu.memory_space<smem>>, %arg2: memref<32x256xf32, #tpu.memory_space<vmem>>, %arg3: memref<32x256xf32, #tpu.memory_space<vmem>>, %arg4: memref<32x256xf32, #tpu.memory_space<vmem>>) attributes {dimension_semantics = [#tpu.dimension_semantics<parallel>], iteration_bounds = array<i64: 1>, scalar_prefetch = 0 : i64, scratch_operands = 0 : i64, tpu.core_type = #tpu.core_type<tc>, window_params = [{transform_indices = @transform_0, window_bounds = array<i64: 2>}, {transform_indices = @transform_1, window_bounds = array<i64: 32, 256>}, {transform_indices = @transform_2, window_bounds = array<i64: 32, 256>}, {transform_indices = @transform_3, window_bounds = array<i64: 32, 256>}]} {
    %c0 = arith.constant 0 : index
    %0 = memref.load %arg1[%c0] : memref<2xf32, #tpu.memory_space<smem>>
    %c1 = arith.constant 1 : index
    %1 = memref.load %arg1[%c1] : memref<2xf32, #tpu.memory_space<smem>>
    %c0_0 = arith.constant 0 : index
    %c0_1 = arith.constant 0 : index
    %2 = vector.load %arg2[%c0_0, %c0_1] : memref<32x256xf32, #tpu.memory_space<vmem>>, vector<32x256xf32>
    %3 = vector.broadcast %0 : f32 to vector<32x256xf32>
    %4 = arith.mulf %3, %2 : vector<32x256xf32>
    %c0_2 = arith.constant 0 : index
    %c0_3 = arith.constant 0 : index
    %5 = vector.load %arg3[%c0_2, %c0_3] : memref<32x256xf32, #tpu.memory_space<vmem>>, vector<32x256xf32>
    %6 = vector.broadcast %1 : f32 to vector<32x256xf32>
    %7 = arith.mulf %6, %5 : vector<32x256xf32>
    %8 = arith.addf %4, %7 : vector<32x256xf32>
    %9 = math.cos %8 : vector<32x256xf32>
    %c0_4 = arith.constant 0 : index
    %c0_5 = arith.constant 0 : index
    %10 = vector.load %arg4[%c0_4, %c0_5] : memref<32x256xf32, #tpu.memory_space<vmem>>, vector<32x256xf32>
    tpu.vector_store %arg4[%c0_4, %c0_5], %9 {strides = array<i32>} : memref<32x256xf32, #tpu.memory_space<vmem>>, vector<32x256xf32>,
    return
  }
  func.func @transform_0(%arg0: i32) -> i32 {
    %c0_i32 = arith.constant 0 : i32
    %c0_i32_0 = arith.constant 0 : i32
    return %c0_i32 : i32
  }
  func.func @transform_1(%arg0: i32) -> (i32, i32) {
    %c0_i32 = arith.constant 0 : i32
    %c0_i32_0 = arith.constant 0 : i32
    return %arg0, %c0_i32 : i32, i32
  }
  func.func @transform_2(%arg0: i32) -> (i32, i32) {
    %c0_i32 = arith.constant 0 : i32
    %c0_i32_0 = arith.constant 0 : i32
    return %arg0, %c0_i32 : i32, i32
  }
  func.func @transform_3(%arg0: i32) -> (i32, i32) {
    %c0_i32 = arith.constant 0 : i32
    %c0_i32_0 = arith.constant 0 : i32
    return %arg0, %c0_i32 : i32, i32
  }
}

</mosaic_0001>

<bundles_post_ra>
// kernel: tpu_custom_call.1
= control target key start
LH: loop header
LB: loop body
LE: loop exit
PB: predicated region body
PF: predicated region fallthrough
CT: control target
= control target key end

     0   :  { %8 = vsyncpa [#allocation5], 0  ;;  %s2410_s0 = inlined_call_operand.hbm [shape: f32[2], index: 0, kind: input, shape index: {}]   ;;  %s2411_s1 = inlined_call_operand.hbm [shape: f32[32,256], index: 1, kind: input, shape index: {}]   ;;  %s2412_s2 = inlined_call_operand.hbm [shape: f32[32,256], index: 2, kind: input, shape index: {}]   ;;  %s2413_s3 = inlined_call_operand.hbm [shape: f32[32,256], index: 3, kind: output, shape index: {}]  }
   0x1   :  { %9 = vsyncpa [#allocation3], 0 }
   0x2   :  { %10 = vsyncpa [#allocation8], 0 }
   0x3   :  { %11 = vsyncpa [#allocation4], 0  ;;  %s17_s14 = sshll.u32 %s2410_s0, 4  ;;  %s25_s17 = sshll.u32 %s2411_s1, 4  ;;  %s18_s14 = int_to_ptr.hbm [resolvable:$true] %s17_s14  ;;  %s26_s17 = int_to_ptr.hbm [resolvable:$true] %s25_s17 }
   0x4   :  { %s1495_s18 = smov [#allocation2]   ;;  %s1496_s19 = smov [#allocation6]  }
   0x5   :  { %20 = dma.hbm_to_smem %s18_s14, 16, %s1495_s18, [#allocation5]  }
   0x6   :  { %s27_s20 = sshll.u32 %s1496_s19, 4  ;;  %s1497_s21 = smov 256   ;;  %s28_s20 = int_to_ptr.vmem [resolvable:$true] %s27_s20 }
   0x7   :  { %s1498_s22 = smov 16   ;;  %s38_s0 = sshll.u32 %s2412_s2, 4  ;;  %s39_s0 = int_to_ptr.hbm [resolvable:$true] %s38_s0 }
   0x8   :  { %33 = dma.hbm_to_vmem [thread:$0]  %s26_s17, 1024, %s28_s20, [#allocation3], %s1497_s21, %s1497_s21, %s1498_s22  }
   0x9   :  { %s1499_s25 = smov [#allocation7]  }
   0xa   :  { %s40_s26 = sshll.u32 %s1499_s25, 4  ;;  %s41_s26 = int_to_ptr.vmem [resolvable:$true] %s40_s26 }
   0xb   :  { %46 = dma.hbm_to_vmem [thread:$0]  %s39_s0, 1024, %s41_s26, [#allocation8], %s1497_s21, %s1497_s21, %s1498_s22  }
   0xc   :  { %1487 = dma.done.wait [#allocation5], 16  }
   0xd   :  { %1488 = vsyncadd [#allocation5], 4294967280 }
   0xe   :  { %1489 = dma.done.wait [#allocation3], 1024  }
   0xf   :  { %1490 = vsyncadd [#allocation3], 4294966272 }
  0x10   :  { %1491 = dma.done.wait [#allocation8], 1024  }
  0x11   :  { %1492 = vsyncadd [#allocation8], 4294966272 }
  0x12   :  { %59 = sfence }
  0x13   :  { %s60_s1 = sld [smem:[#allocation2]]  ;;  %v62_v0 = vld [vmem:[#allocation6] sm:$0xff]  ;;  %v63_v1 = vld [vmem:[#allocation6 + $0x8] sm:$0xff]  ;;  %v64_v2 = vld [vmem:[#allocation6 + $0x10] sm:$0xff]  ;;  %s1507_s2 = smov [#allocation9]  }
  0x14   :  { %s1365_s27 = sld [smem:[#allocation2 + $0x1]]  ;;  %v65_v3 = vld [vmem:[#allocation6 + $0x18] sm:$0xff]  ;;  %v66_v4 = vld [vmem:[#allocation6 + $0x20] sm:$0xff]  ;;  %v67_v5 = vld [vmem:[#allocation6 + $0x28] sm:$0xff]  ;;  %s1348_s28 = sshll.u32 %s1507_s2, 4  ;;  %s1349_s28 = int_to_ptr.vmem [resolvable:$true] %s1348_s28 }
  0x15   :  { %v68_v6 = vld [vmem:[#allocation6 + $0x30] sm:$0xff]  ;;  %v69_v7 = vld [vmem:[#allocation6 + $0x38] sm:$0xff]  ;;  %v79_v9 = vld [vmem:[#allocation7] sm:$0xff]  ;;  %s1350_s4 = sshll.u32 %s2413_s3, 4  ;;  %s1351_s4 = int_to_ptr.hbm [resolvable:$true] %s1350_s4 }
  0x16   :  { %v80_v10 = vld [vmem:[#allocation7 + $0x8] sm:$0xff]  ;;  %v81_v12 = vld [vmem:[#allocation7 + $0x10] sm:$0xff]  ;;  %v82_v13 = vld [vmem:[#allocation7 + $0x18] sm:$0xff] }
  0x17   :  { %v83_v14 = vld [vmem:[#allocation7 + $0x20] sm:$0xff]  ;;  %v84_v19 = vld [vmem:[#allocation7 + $0x28] sm:$0xff]  ;;  %v85_v20 = vld [vmem:[#allocation7 + $0x30] sm:$0xff] }
  0x18   :  { %v86_v21 = vld [vmem:[#allocation7 + $0x38] sm:$0xff] }
  0x19   :  { %v70_v8 = vstv %s60_s1 }
  0x1a   :  { %v71_v11 = vmul.f32 %v70_v8, %v62_v0  ;;  %v72_v15 = vmul.f32 %v70_v8, %v63_v1  ;;  %v73_v16 = vmul.f32 %v70_v8, %v64_v2  ;;  %v74_v17 = vmul.f32 %v70_v8, %v65_v3 }
  0x1b   :  { %v75_v18 = vmul.f32 %v70_v8, %v66_v4  ;;  %v76_v22 = vmul.f32 %v70_v8, %v67_v5  ;;  %v77_v23 = vmul.f32 %v70_v8, %v68_v6  ;;  %v78_v24 = vmul.f32 %v70_v8, %v69_v7 }
  0x1c   :  { %v87_v25 = vstv %s1365_s27  ;;  %v1500_v3 = vmov 683565275   ;;  %v1501_v5 = vmov 2475754826   ;;  %v1502_v7 = vmov 2131351028  }
  0x1d   :  { %v88_v26 = vmul.f32 %v87_v25, %v79_v9  ;;  %v89_v27 = vmul.f32 %v87_v25, %v80_v10  ;;  %v90_v28 = vmul.f32 %v87_v25, %v81_v12  ;;  %v91_v29 = vmul.f32 %v87_v25, %v82_v13 }
  0x1e   :  { %v92_v30 = vmul.f32 %v87_v25, %v83_v14  ;;  %v93_v31 = vmul.f32 %v87_v25, %v84_v19  ;;  %v94_v32 = vmul.f32 %v87_v25, %v85_v20  ;;  %v95_v33 = vmul.f32 %v87_v25, %v86_v21 }
  0x1f   :  { %v1543_v34 = vadd.f32 %v88_v26, %v71_v11  ;;  %v1545_v35 = vadd.f32 %v89_v27, %v72_v15  ;;  %v1547_v36 = vadd.f32 %v90_v28, %v73_v16  ;;  %v1549_v37 = vadd.f32 %v91_v29, %v74_v17 }
  0x20   :  { %v1551_v38 = vadd.f32 %v92_v30, %v75_v18  ;;  %v1553_v39 = vadd.f32 %v93_v31, %v76_v22  ;;  %v1555_v40 = vadd.f32 %v94_v32, %v77_v23  ;;  %v1557_v41 = vadd.f32 %v95_v33, %v78_v24 }
  0x21   :  { %v104_v42 = vand.u32 2147483647, %v1543_v34  ;;  %v107_v43 = vand.u32 2139095040, %v1543_v34  ;;  %v258_v44 = vand.u32 2147483647, %v1545_v35  ;;  %v261_v45 = vand.u32 2139095040, %v1545_v35 }
  0x22   :  { %v415_v46 = vand.u32 2139095040, %v1547_v36  ;;  %v1503_v9 = vmov 2102212464   ;;  %v1504_v11 = vmov 920167782  }
  0x23   :  { %v108_v47 = vshrl.u32 %v107_v43, 23  ;;  %v111_v48 = vand.u32 8388607, %v104_v42  ;;  %v262_v49 = vshrl.u32 %v261_v45, 23  ;;  %v265_v50 = vand.u32 8388607, %v258_v44 }
  0x24   :  { %v416_v54 = vshrl.u32 %v415_v46, 23  ;;  %v1505_v20 = vmov 1326507024  }
  0x25   :  { %v1366_v51 = vadd.s32 4294967169, %v108_v47  ;;  %v112_v52 = vor.u32 8388608, %v111_v48  ;;  %v1369_v53 = vadd.s32 4294967169, %v262_v49  ;;  %v266_v56 = vor.u32 8388608, %v265_v50 }
  0x26   :  { %v1372_v60 = vadd.s32 4294967169, %v416_v54 }
  0x27   :  { %v114_v55 = vadd.s32 1, %v1366_v51  ;;  %v268_v57 = vadd.s32 1, %v1369_v53  ;;  %v1568_v59 = vshll.u32 %v112_v52, 8  ;;  %v1574_v1 = vshll.u32 %v266_v56, 8 }
  0x28   :  { %v1582_v14 = vadd.s32 1, %v1372_v60 }
  0x29   :  { %vm115_vm0 = vcmp.gt.s32.totalorder %v114_v55, 0  ;;  %vm269_vm1 = vcmp.gt.s32.totalorder %v268_v57, 0  ;;  %v153_v13 = vand.u32 65535, %v1568_v59  ;;  %v154_v18 = vshrl.u32 %v1568_v59, 16 }
  0x2a   :  { %v116_v58 = vsel %vm115_vm0, %v114_v55, 0  ;;  %v270_v62 = vsel %vm269_vm1, %v268_v57, 0  ;;  %vm423_vm15 = vcmp.gt.s32.totalorder %v1582_v14, 0 }
  0x2b   :  { %v118_v61 = vand.u32 31, %v116_v58  ;;  %v1570_v63 = vshrl.u32 %v116_v58, 5  ;;  %v1572_v0 = vand.u32 31, %v270_v62  ;;  %v1602_v31 = vshrl.u32 %v270_v62, 5 }
  0x2d   :  { %v119_v2 = vsub.s32 32, %v118_v61  ;;  %v121_v4 = vshll.u32 %v1500_v3, %v118_v61  ;;  %v124_v6 = vshll.u32 %v1501_v5, %v118_v61  ;;  %v127_v8 = vshll.u32 %v1502_v7, %v118_v61 }
  0x2e   :  { %v130_v10 = vshll.u32 %v1503_v9, %v118_v61  ;;  %v133_v12 = vshll.u32 %v1504_v11, %v118_v61  ;;  %vm136_vm2 = vcmp.lt.s32.totalorder %v1570_v63, 1  ;;  %vm139_vm3 = vcmp.lt.s32.totalorder %v1570_v63, 4 }
  0x2f   :  { %v122_v15 = vshrl.u32 %v1501_v5, %v119_v2  ;;  %v125_v16 = vshrl.u32 %v1502_v7, %v119_v2  ;;  %v128_v17 = vshrl.u32 %v1503_v9, %v119_v2  ;;  %v131_v19 = vshrl.u32 %v1504_v11, %v119_v2 }
  0x30   :  { %v134_v21 = vshrl.u32 %v1505_v20, %v119_v2  ;;  %v1593_v25 = vsub.s32 32, %v1572_v0  ;;  %v120_v26 = vshrl.u32 %v1500_v3, %v119_v2  ;;  %vm138_vm4 = vcmp.lt.s32.totalorder %v1570_v63, 3 }
  0x31   :  { %v123_v22 = vor.u32 %v122_v15, %v121_v4  ;;  %v126_v23 = vor.u32 %v125_v16, %v124_v6  ;;  %v129_v24 = vor.u32 %v128_v17, %v127_v8  ;;  %v132_v27 = vor.u32 %v131_v19, %v130_v10 }
  0x32   :  { %v135_v28 = vor.u32 %v134_v21, %v133_v12  ;;  %vm137_vm5 = vcmp.lt.s32.totalorder %v1570_v63, 2  ;;  %v275_v43 = vshll.u32 %v1500_v3, %v1572_v0  ;;  %v278_v45 = vshll.u32 %v1501_v5, %v1572_v0 }
  0x33   :  { %v144_v29 = vsel %vm136_vm2, %v123_v22, %v126_v23  ;;  %v148_v30 = vsel %vm136_vm2, %v126_v23, %v129_v24  ;;  %v145_v32 = vsel %vm139_vm3, %v132_v27, 920167782  ;;  %v141_v46 = vsel %vm139_vm3, %v129_v24, 2102212464 }
  0x34   :  { %v149_v33 = vsel %vm139_vm3, %v135_v28, 1326507024  ;;  %v146_v47 = vsel %vm138_vm4, %v129_v24, %v145_v32  ;;  %v276_v49 = vshrl.u32 %v1501_v5, %v1593_v25  ;;  %v140_v50 = vsel %vm136_vm2, %v120_v26, %v123_v22 }
  0x35   :  { %v150_v48 = vsel %vm138_vm4, %v132_v27, %v149_v33  ;;  %v147_v51 = vsel %vm137_vm5, %v144_v29, %v146_v47  ;;  %v279_v53 = vshrl.u32 %v1502_v7, %v1593_v25  ;;  %v142_v58 = vsel %vm138_vm4, %v126_v23, %v141_v46 }
  0x36   :  { %v151_v52 = vsel %vm137_vm5, %v148_v30, %v150_v48  ;;  %v177_v56 = vand.u32 65535, %v147_v51  ;;  %v178_v57 = vshrl.u32 %v147_v51, 16  ;;  %v1630_v60 = vor.u32 %v276_v49, %v275_v43 }
  0x37   :  { %v155_v54 = vand.u32 65535, %v151_v52  ;;  %v156_v55 = vshrl.u32 %v151_v52, 16  ;;  %v1632_v61 = vor.u32 %v279_v53, %v278_v45  ;;  %v281_v62 = vshll.u32 %v1502_v7, %v1572_v0 }
  0x38   :  { %v282_v8 = vshrl.u32 %v1503_v9, %v1593_v25  ;;  %v179_v12 = vmul.u32 %v177_v56, %v153_v13  ;;  %v180_v15 = vmul.u32 %v178_v57, %v153_v13  ;;  %v181_v16 = vmul.u32 %v177_v56, %v154_v18 }
  0x39   :  { %v157_v2 = vmul.u32 %v155_v54, %v153_v13  ;;  %v158_v4 = vmul.u32 %v156_v55, %v153_v13  ;;  %v159_v6 = vmul.u32 %v155_v54, %v154_v18  ;;  %v160_v10 = vmul.u32 %v156_v55, %v154_v18 }
  0x3a   :  { %v182_v22 = vmul.u32 %v178_v57, %v154_v18  ;;  %v183_v24 = vshll.u32 %v180_v15, 16  ;;  %v184_v26 = vshrl.u32 %v180_v15, 16  ;;  %v185_v27 = vshll.u32 %v181_v16, 16 }
  0x3b   :  { %v161_v17 = vshll.u32 %v158_v4, 16  ;;  %v162_v19 = vshrl.u32 %v158_v4, 16  ;;  %v163_v21 = vshll.u32 %v159_v6, 16  ;;  %v164_v23 = vshrl.u32 %v159_v6, 16 }
  0x3c   :  { %v186_v29 = vshrl.u32 %v181_v16, 16  ;;  %v284_v30 = vshll.u32 %v1503_v9, %v1572_v0  ;;  %v1506_v32 = vmov 0   ;;  %vm187_vm7 = vc.u32 %v179_v12, %v183_v24 }
  0x3d   :  { %vm165_vm6 = vc.u32 %v157_v2, %v161_v17  ;;  %v167_v28 = vadd.s32 %v161_v17, %v157_v2  ;;  %v189_v13 = vadd.s32 %v183_v24, %v179_v12  ;;  %v285_v43 = vshrl.u32 %v1504_v11, %v1593_v25 }
  0x3e   :  { %v166_v33 = vsel %vm165_vm6, 1, %v1506_v32  ;;  %v188_v18 = vsel %vm187_vm7, 1, %v1506_v32  ;;  %v287_v46 = vshll.u32 %v1504_v11, %v1572_v0  ;;  %v283_v49 = vor.u32 %v282_v8, %v281_v62 }
  0x3f   :  { %v168_v45 = vadd.s32 %v166_v33, %v160_v10  ;;  %vm169_vm8 = vc.u32 %v167_v28, %v163_v21  ;;  %v190_v48 = vadd.s32 %v188_v18, %v182_v22  ;;  %vm191_vm9 = vc.u32 %v189_v13, %v185_v27 }
  0x40   :  { %v170_v47 = vsel %vm169_vm8, 1, %v1506_v32  ;;  %v192_v52 = vsel %vm191_vm9, 1, %v1506_v32  ;;  %v286_v53 = vor.u32 %v285_v43, %v284_v30  ;;  %v288_v54 = vshrl.u32 %v1505_v20, %v1593_v25 }
  0x41   :  { %v172_v51 = vadd.s32 %v170_v47, %v168_v45  ;;  %v1650_v55 = vadd.s32 %v189_v13, %v185_v27  ;;  %v194_v56 = vadd.s32 %v192_v52, %v190_v48  ;;  %vm290_vm10 = vcmp.lt.s32.totalorder %v1602_v31, 1 }
  0x42   :  { %vm292_vm11 = vcmp.lt.s32.totalorder %v1602_v31, 3  ;;  %v289_v57 = vor.u32 %v288_v54, %v287_v46  ;;  %vm291_vm12 = vcmp.lt.s32.totalorder %v1602_v31, 2  ;;  %vm293_vm13 = vcmp.lt.s32.totalorder %v1602_v31, 4 }
  0x43   :  { %v173_v0 = vadd.s32 %v172_v51, %v162_v19  ;;  %v143_v62 = vsel %vm137_vm5, %v140_v50, %v142_v58  ;;  %v195_v2 = vadd.s32 %v194_v56, %v184_v26  ;;  %v298_v4 = vsel %vm290_vm10, %v1630_v60, %v1632_v61 }
  0x44   :  { %v299_v6 = vsel %vm293_vm13, %v286_v53, 920167782  ;;  %v302_v12 = vsel %vm290_vm10, %v1632_v61, %v283_v49  ;;  %v307_v63 = vand.u32 65535, %v1574_v1  ;;  %v303_v15 = vsel %vm293_vm13, %v289_v57, 1326507024 }
  0x45   :  { %v1664_v8 = vadd.s32 %v173_v0, %v164_v23  ;;  %v300_v10 = vsel %vm292_vm11, %v283_v49, %v299_v6  ;;  %v196_v50 = vadd.s32 %v195_v2, %v186_v29  ;;  %v308_v16 = vshrl.u32 %v1574_v1, 16 }
  0x46   :  { %v301_v58 = vsel %vm291_vm12, %v298_v4, %v300_v10  ;;  %v197_v17 = vmul.u32 %v1568_v59, %v143_v62  ;;  %v304_v19 = vsel %vm292_vm11, %v286_v53, %v303_v15  ;;  %v274_v26 = vshrl.u32 %v1500_v3, %v1593_v25 }
  0x47   :  { %vm199_vm14 = vc.u32 %v1664_v8, %v1650_v55  ;;  %v331_v21 = vand.u32 65535, %v301_v58  ;;  %v200_v22 = vadd.s32 1, %v196_v50  ;;  %v305_v23 = vsel %vm291_vm12, %v302_v12, %v304_v19 }
  0x48   :  { %v332_v24 = vshrl.u32 %v301_v58, 16  ;;  %v309_v27 = vand.u32 65535, %v305_v23  ;;  %v310_v28 = vshrl.u32 %v305_v23, 16  ;;  %v295_v29 = vsel %vm293_vm13, %v283_v49, 2102212464 }
  0x49   :  { %v201_v59 = vsel %vm199_vm14, %v200_v22, %v196_v50  ;;  %v335_v33 = vmul.u32 %v331_v21, %v308_v16  ;;  %v333_v18 = vmul.u32 %v331_v21, %v307_v63  ;;  %v412_v48 = vand.u32 2147483647, %v1547_v36 }
  0x4a   :  { %v334_v30 = vmul.u32 %v332_v24, %v307_v63  ;;  %v202_v13 = vadd.s32 %v201_v59, %v197_v17  ;;  %v311_v43 = vmul.u32 %v309_v27, %v307_v63  ;;  %v312_v45 = vmul.u32 %v310_v28, %v307_v63 }
  0x4b   :  { %v313_v46 = vmul.u32 %v309_v27, %v308_v16  ;;  %v424_v25 = vsel %vm423_vm15, %v1582_v14, 0  ;;  %v294_v52 = vsel %vm290_vm10, %v274_v26, %v1630_v60  ;;  %v314_v53 = vmul.u32 %v310_v28, %v308_v16 }
  0x4c   :  { %v337_v47 = vshll.u32 %v334_v30, 16  ;;  %v203_v51 = vadd.s32 536870912, %v202_v13  ;;  %v315_v54 = vshll.u32 %v312_v45, 16  ;;  %v296_v49 = vsel %vm292_vm11, %v1632_v61, %v295_v29 }
  0x4d   :  { %v317_v56 = vshll.u32 %v313_v46, 16  ;;  %v336_v0 = vmul.u32 %v332_v24, %v308_v16  ;;  %v339_v57 = vshll.u32 %v335_v33, 16  ;;  %v426_v60 = vand.u32 31, %v424_v25 }
  0x4e   :  { %v1697_v62 = vshrl.u32 %v203_v51, 30  ;;  %vm319_vm0 = vc.u32 %v311_v43, %v315_v54  ;;  %v321_v2 = vadd.s32 %v315_v54, %v311_v43  ;;  %vm341_vm1 = vc.u32 %v333_v18, %v337_v47 }
  0x4f   :  { %v320_v14 = vsel %vm319_vm0, 1, %v1506_v32  ;;  %v342_v4 = vsel %vm341_vm1, 1, %v1506_v32  ;;  %v343_v6 = vadd.s32 %v337_v47, %v333_v18  ;;  %v316_v12 = vshrl.u32 %v312_v45, 16 }
  0x50   :  { %v205_v10 = vshll.u32 %v1697_v62, 30  ;;  %v322_v63 = vadd.s32 %v320_v14, %v314_v53  ;;  %vm323_vm2 = vc.u32 %v321_v2, %v317_v56  ;;  %v338_v50 = vshrl.u32 %v334_v30, 16 }
  0x51   :  { %v324_v61 = vsel %vm323_vm2, 1, %v1506_v32  ;;  %v344_v58 = vadd.s32 %v342_v4, %v336_v0  ;;  %vm345_vm3 = vc.u32 %v343_v6, %v339_v57  ;;  %v318_v16 = vshrl.u32 %v313_v46, 16 }
  0x52   :  { %v206_v15 = vsub.s32 %v202_v13, %v205_v10  ;;  %v326_v17 = vadd.s32 %v324_v61, %v322_v63  ;;  %v346_v19 = vsel %vm345_vm3, 1, %v1506_v32  ;;  %v340_v21 = vshrl.u32 %v335_v33, 16 }
  0x53   :  { %v348_v22 = vadd.s32 %v346_v19, %v344_v58  ;;  %v1704_v23 = vsub.s32 32, %v426_v60  ;;  %v1706_v27 = vadd.s32 %v343_v6, %v339_v57  ;;  %v297_v28 = vsel %vm291_vm12, %v294_v52, %v296_v49 }
  0x54   :  { %vm207_vm4 = vcmp.lt.s32.totalorder %v206_v15, 0  ;;  %v208_v24 = vsub.s32 0, %v206_v15  ;;  %v327_v26 = vadd.s32 %v326_v17, %v316_v12  ;;  %v419_v13 = vand.u32 8388607, %v412_v48 }
  0x55   :  { %v349_v59 = vadd.s32 %v348_v22, %v338_v50  ;;  %v429_v45 = vshll.u32 %v1500_v3, %v426_v60  ;;  %v430_v18 = vshrl.u32 %v1501_v5, %v1704_v23  ;;  %v198_v46 = vadd.s32 %v1650_v55, %v1664_v8 }
  0x56   :  { %v209_v29 = vsel %vm207_vm4, %v208_v24, %v206_v15  ;;  %v1710_v30 = vadd.s32 %v327_v26, %v318_v16  ;;  %v351_v31 = vmul.u32 %v1574_v1, %v297_v28  ;;  %v1722_v47 = vshrl.u32 %v424_v25, 5 }
  0x57   :  { %v210_v43 = vclz %v209_v29  ;;  %v350_v33 = vadd.s32 %v349_v59, %v340_v21  ;;  %v438_v53 = vshll.u32 %v1503_v9, %v426_v60  ;;  %v439_v54 = vshrl.u32 %v1504_v11, %v1704_v23 }
  0x58   :  { %vm353_vm5 = vc.u32 %v1710_v30, %v1706_v27  ;;  %v432_v49 = vshll.u32 %v1501_v5, %v426_v60  ;;  %v433_v56 = vshrl.u32 %v1502_v7, %v1704_v23  ;;  %v435_v55 = vshll.u32 %v1502_v7, %v426_v60 }
  0x59   :  { %v1367_v51 = vadd.s32 4294967294, %v210_v43  ;;  %v354_v52 = vadd.s32 1, %v350_v33  ;;  %v436_v1 = vshrl.u32 %v1503_v9, %v1704_v23  ;;  %v228_v8 = vsub.s32 4, %v1697_v62 }
  0x5a   :  { %v431_v0 = vor.u32 %v430_v18, %v429_v45  ;;  %v441_v14 = vshll.u32 %v1504_v11, %v426_v60  ;;  %v442_v4 = vshrl.u32 %v1505_v20, %v1704_v23  ;;  %v440_v63 = vor.u32 %v439_v54, %v438_v53 }
  0x5b   :  { %vm1368_vm6 = vcmp.lt.s32.totalorder %v1367_v51, 0  ;;  %v355_v25 = vsel %vm353_vm5, %v354_v52, %v350_v33  ;;  %v434_v50 = vor.u32 %v433_v56, %v432_v49  ;;  %v437_v58 = vor.u32 %v436_v1, %v435_v55 }
  0x5c   :  { %v213_v57 = vsel %vm1368_vm6, 0, %v1367_v51  ;;  %v356_v2 = vadd.s32 %v355_v25, %v351_v31  ;;  %vm444_vm7 = vcmp.lt.s32.totalorder %v1722_v47, 1  ;;  %vm446_vm8 = vcmp.lt.s32.totalorder %v1722_v47, 3 }
  0x5d   :  { %v214_v6 = vsub.s32 32, %v213_v57  ;;  %v215_v10 = vshll.u32 %v206_v15, %v213_v57  ;;  %v218_v12 = vsub.s32 4294967266, %v213_v57  ;;  %vm447_vm9 = vcmp.lt.s32.totalorder %v1722_v47, 4 }
  0x5e   :  { %v357_v61 = vadd.s32 536870912, %v356_v2  ;;  %vm106_vm10 = vcmp.lt.s32.totalorder %v1543_v34, 0  ;;  %v420_v19 = vor.u32 8388608, %v419_v13  ;;  %v443_v21 = vor.u32 %v442_v4, %v441_v14 }
  0x5f   :  { %v216_v16 = vshrl.u32 %v198_v46, %v214_v6  ;;  %v219_v17 = vadd.s32 127, %v218_v12  ;;  %v229_v24 = vsel %vm106_vm10, %v228_v8, %v1697_v62  ;;  %v453_v26 = vsel %vm447_vm9, %v440_v63, 920167782 }
  0x60   :  { %v1741_v60 = vshrl.u32 %v357_v61, 30  ;;  %vm445_vm11 = vcmp.lt.s32.totalorder %v1722_v47, 2  ;;  %v452_v59 = vsel %vm444_vm7, %v431_v0, %v434_v50  ;;  %v454_v29 = vsel %vm446_vm8, %v437_v58, %v453_v26 }
  0x61   :  { %v217_v15 = vor.u32 %v216_v16, %v215_v10  ;;  %v220_v22 = vshll.u32 %v219_v17, 23  ;;  %vm1756_vm12 = vcmp.le.f32.partialorder %v104_v42, 0.7853982  ;;  %v456_v33 = vsel %vm444_vm7, %v434_v50, %v437_v58 }
  0x62   :  { %v359_v28 = vshll.u32 %v1741_v60, 30  ;;  %v231_v45 = vsel %vm1756_vm12, 0, %v229_v24  ;;  %v457_v46 = vsel %vm447_vm9, %v443_v21, 1326507024  ;;  %v1768_v31 = vshll.u32 %v420_v19, 8 }
  0x63   :  { %v221_v62 = vor.u32 4788187, %v220_v22  ;;  %v224_v43 = vcvt.s32.f32 %v217_v15  ;;  %v428_v42 = vshrl.u32 %v1500_v3, %v1704_v23  ;;  %v455_v52 = vsel %vm445_vm11, %v452_v59, %v454_v29 }
  0x64   :  { %v1764_v18 = vsub.s32 %v356_v2, %v359_v28  ;;  %v458_v53 = vsel %vm446_vm8, %v440_v63, %v457_v46  ;;  %v461_v56 = vand.u32 65535, %v1768_v31  ;;  %v462_v1 = vshrl.u32 %v1768_v31, 16 }
  0x65   :  { %v222_v51 = vand.u32 2147483647, %v221_v62  ;;  %v459_v49 = vsel %vm445_vm11, %v456_v33, %v458_v53  ;;  %v449_v57 = vsel %vm447_vm9, %v437_v58, 2102212464  ;;  %v486_v2 = vshrl.u32 %v455_v52, 16 }
  0x66   :  { %vm361_vm13 = vcmp.lt.s32.totalorder %v1764_v18, 0  ;;  %v362_v54 = vsub.s32 0, %v1764_v18  ;;  %v463_v8 = vand.u32 65535, %v459_v49  ;;  %v464_v23 = vshrl.u32 %v459_v49, 16 }
  0x67   :  { %v225_v55 = vmul.f32 %v224_v43, %v222_v51  ;;  %v1785_v12 = vand.u32 3, %v231_v45  ;;  %v352_v63 = vadd.s32 %v1706_v27, %v1710_v30  ;;  %v448_v61 = vsel %vm444_vm7, %v428_v42, %v431_v0 }
  0x68   :  { %v363_v25 = vsel %vm361_vm13, %v362_v54, %v1764_v18  ;;  %v465_v6 = vmul.u32 %v463_v8, %v461_v56  ;;  %v466_v10 = vmul.u32 %v464_v23, %v461_v56  ;;  %v1791_v16 = vmul.u32 %v463_v8, %v462_v1 }
  0x69   :  { %v226_v14 = vxor.u32 2147483648, %v225_v55  ;;  %v364_v4 = vclz %v363_v25  ;;  %v450_v58 = vsel %vm446_vm8, %v434_v50, %v449_v57  ;;  %v382_v27 = vsub.s32 4, %v1741_v60 }
  0x6a   :  { %v469_v21 = vshll.u32 %v466_v10, 16  ;;  %v468_v30 = vmul.u32 %v464_v23, %v462_v1  ;;  %v485_v22 = vand.u32 65535, %v455_v52  ;;  %v1805_v24 = vmul.u32 %v486_v2, %v461_v56 }
  0x6b   :  { %v227_v17 = vsel %vm106_vm10, %v226_v14, %v225_v55  ;;  %v1370_v19 = vadd.s32 4294967294, %v364_v4  ;;  %v471_v50 = vshll.u32 %v1791_v16, 16  ;;  %vm260_vm0 = vcmp.lt.s32.totalorder %v1545_v35, 0 }
  0x6c   :  { %v1800_v15 = vsel %vm1756_vm12, %v1543_v34, %v227_v17  ;;  %vm473_vm15 = vc.u32 %v465_v6, %v469_v21  ;;  %v475_v59 = vadd.s32 %v469_v21, %v465_v6  ;;  %v487_v46 = vmul.u32 %v485_v22, %v461_v56 }
  0x6d   :  { %v232_v0 = vmul.f32 %v1800_v15, %v1800_v15  ;;  %vm1371_vm14 = vcmp.lt.s32.totalorder %v1370_v19, 0  ;;  %v474_v28 = vsel %vm473_vm15, 1, %v1506_v32  ;;  %v489_v51 = vmul.u32 %v485_v22, %v462_v1 }
  0x6e   :  { %v367_v26 = vsel %vm1371_vm14, 0, %v1370_v19  ;;  %v476_v45 = vadd.s32 %v474_v28, %v468_v30  ;;  %v470_v54 = vshrl.u32 %v466_v10, 16  ;;  %vm253_vm1 = vcmp.eq.s32.totalorder %v1785_v12, 2 }
  0x6f   :  { %v233_v29 = vmul.f32 -0.001358992, %v232_v0  ;;  %v240_v13 = vmul.f32 -0.00019511016, %v232_v0  ;;  %v368_v62 = vsub.s32 32, %v367_v26  ;;  %v369_v43 = vshll.u32 %v1764_v18, %v367_v26 }
  0x70   :  { %v372_v33 = vsub.s32 4294967266, %v367_v26  ;;  %vm477_vm2 = vc.u32 %v475_v59, %v471_v50  ;;  %v490_v55 = vmul.u32 %v486_v2, %v462_v1  ;;  %v491_v8 = vshll.u32 %v1805_v24, 16 }
  0x71   :  { %v234_v42 = vadd.f32 0.041655596, %v233_v29  ;;  %v241_v52 = vadd.f32 0.008332121, %v240_v13  ;;  %v370_v53 = vshrl.u32 %v352_v63, %v368_v62  ;;  %v478_v18 = vsel %vm477_vm2, 1, %v1506_v32 }
  0x72   :  { %v373_v49 = vadd.s32 127, %v372_v33  ;;  %vm1816_vm3 = vcmp.le.f32.partialorder %v258_v44, 0.7853982  ;;  %v472_v4 = vshrl.u32 %v1791_v16, 16  ;;  %v480_v6 = vadd.s32 %v478_v18, %v476_v45 }
  0x73   :  { %v235_v23 = vmul.f32 %v234_v42, %v232_v0  ;;  %v242_v25 = vmul.f32 %v241_v52, %v232_v0  ;;  %v371_v57 = vor.u32 %v370_v53, %v369_v43  ;;  %v493_v10 = vshll.u32 %v489_v51, 16 }
  0x74   :  { %v374_v14 = vshll.u32 %v373_v49, 23  ;;  %vm495_vm4 = vc.u32 %v487_v46, %v491_v8  ;;  %v481_v19 = vadd.s32 %v480_v6, %v470_v54  ;;  %v497_v30 = vadd.s32 %v491_v8, %v487_v46 }
  0x75   :  { %v236_v63 = vadd.f32 -0.4999988, %v235_v23  ;;  %v243_v1 = vadd.f32 -0.16666654, %v242_v25  ;;  %v378_v2 = vcvt.s32.f32 %v371_v57  ;;  %v496_v21 = vsel %vm495_vm4, 1, %v1506_v32 }
  0x76   :  { %v375_v17 = vor.u32 4788187, %v374_v14  ;;  %v451_v44 = vsel %vm445_vm11, %v448_v61, %v450_v58  ;;  %v498_v50 = vadd.s32 %v496_v21, %v490_v55  ;;  %v383_v16 = vsel %vm260_vm0, %v382_v27, %v1741_v60 }
  0x77   :  { %v237_v22 = vmul.f32 %v236_v63, %v232_v0  ;;  %v244_v26 = vmul.f32 %v243_v1, %v232_v0  ;;  %v492_v59 = vshrl.u32 %v1805_v24, 16  ;;  %vm499_vm5 = vc.u32 %v497_v30, %v493_v10 }
  0x78   :  { %v376_v28 = vand.u32 2147483647, %v375_v17  ;;  %v500_v62 = vsel %vm499_vm5, 1, %v1506_v32  ;;  %v569_v43 = vand.u32 2139095040, %v1549_v37  ;;  %v1830_v0 = vadd.s32 %v481_v19, %v472_v4 }
  0x79   :  { %v238_v29 = vadd.f32 1.0, %v237_v22  ;;  %v245_v13 = vadd.f32 1.0, %v244_v26  ;;  %v494_v47 = vshrl.u32 %v489_v51, 16  ;;  %v502_v61 = vadd.s32 %v500_v62, %v498_v50 }
  0x7a   :  { %v379_v33 = vmul.f32 %v378_v2, %v376_v28  ;;  %v1833_v46 = vadd.s32 %v497_v30, %v493_v10  ;;  %v570_v60 = vshrl.u32 %v569_v43, 23  ;;  %vm247_vm6 = vweird.f32 %v1543_v34 }
  0x7b   :  { %v246_v58 = vmul.f32 %v245_v13, %v1800_v15  ;;  %v254_v45 = vxor.u32 2147483648, %v238_v29  ;;  %vm250_vm7 = vcmp.eq.s32.totalorder %v1785_v12, 0  ;;  %v503_v24 = vadd.s32 %v502_v61, %v492_v59 }
  0x7c   :  { %v380_v27 = vxor.u32 2147483648, %v379_v33  ;;  %vm249_vm8 = vcmp.lt.s32.totalorder %v1785_v12, 2  ;;  %v1375_v51 = vadd.s32 4294967169, %v570_v60  ;;  %v385_v53 = vsel %vm1816_vm3, 0, %v383_v16 }
  0x7d   :  { %v251_v42 = vxor.u32 2147483648, %v246_v58  ;;  %v255_v52 = vsel %vm253_vm1, %v254_v45, %v246_v58  ;;  %v504_v54 = vadd.s32 %v503_v24, %v494_v47  ;;  %v505_v49 = vmul.u32 %v1768_v31, %v451_v44 }
  0x7e   :  { %v381_v15 = vsel %vm260_vm0, %v380_v27, %v379_v33  ;;  %vm507_vm9 = vc.u32 %v1830_v0, %v1833_v46  ;;  %v576_v12 = vadd.s32 1, %v1375_v51  ;;  %v1852_v14 = vand.u32 3, %v385_v53 }
  0x7f   :  { %v252_v55 = vsel %vm250_vm7, %v238_v29, %v251_v42  ;;  %v384_v8 = vsel %vm1816_vm3, %v1545_v35, %v381_v15  ;;  %v508_v57 = vadd.s32 1, %v504_v54  ;;  %v566_v4 = vand.u32 2147483647, %v1549_v37 }
  0x80   :  { %v256_v23 = vsel %vm249_vm8, %v252_v55, %v255_v52  ;;  %v386_v25 = vmul.f32 %v384_v8, %v384_v8  ;;  %vm577_vm10 = vcmp.gt.s32.totalorder %v576_v12, 0  ;;  %vm407_vm11 = vcmp.eq.s32.totalorder %v1852_v14, 2 }
  0x81   :  { %v257_v18 = vsel %vm247_vm6, nan, %v256_v23  ;;  %v509_v10 = vsel %vm507_vm9, %v508_v57, %v504_v54  ;;  %v578_v56 = vsel %vm577_vm10, %v576_v12, 0  ;;  %v573_v34 = vand.u32 8388607, %v566_v4 }
  0x82   :  { %v387_v31 = vmul.f32 -0.001358992, %v386_v25  ;;  %v394_v6 = vmul.f32 -0.00019511016, %v386_v25  ;;  %1336 = vst [vmem:[#allocation9] sm:$0xff] %v257_v18  ;;  %v510_v63 = vadd.s32 %v509_v10, %v505_v49  ;;  %v580_v1 = vand.u32 31, %v578_v56 }
  0x83   :  { %v723_v30 = vand.u32 2139095040, %v1551_v38  ;;  %v720_v50 = vand.u32 2147483647, %v1551_v38  ;;  %vm404_vm12 = vcmp.eq.s32.totalorder %v1852_v14, 0  ;;  %vm403_vm13 = vcmp.lt.s32.totalorder %v1852_v14, 2 }
  0x84   :  { %v388_v2 = vadd.f32 0.041655596, %v387_v31  ;;  %v395_v17 = vadd.f32 0.008332121, %v394_v6  ;;  %v511_v19 = vadd.s32 536870912, %v510_v63  ;;  %v1858_v21 = vsub.s32 32, %v580_v1 }
  0x85   :  { %v583_v44 = vshll.u32 %v1500_v3, %v580_v1  ;;  %v586_v59 = vshll.u32 %v1501_v5, %v580_v1  ;;  %v592_v29 = vshll.u32 %v1503_v9, %v580_v1  ;;  %vm401_vm14 = vweird.f32 %v1545_v35 }
  0x86   :  { %v389_v22 = vmul.f32 %v388_v2, %v386_v25  ;;  %v396_v26 = vmul.f32 %v395_v17, %v386_v25  ;;  %v1864_v28 = vshrl.u32 %v511_v19, 30  ;;  %v584_v16 = vshrl.u32 %v1501_v5, %v1858_v21 }
  0x87   :  { %v587_v43 = vshrl.u32 %v1502_v7, %v1858_v21  ;;  %v593_v33 = vshrl.u32 %v1504_v11, %v1858_v21  ;;  %v574_v61 = vor.u32 8388608, %v573_v34  ;;  %v1877_v58 = vshrl.u32 %v578_v56, 5 }
  0x88   :  { %v390_v13 = vadd.f32 -0.4999988, %v389_v22  ;;  %v397_v62 = vadd.f32 -0.16666654, %v396_v26  ;;  %v513_v47 = vshll.u32 %v1864_v28, 30  ;;  %v724_v45 = vshrl.u32 %v723_v30, 23 }
  0x89   :  { %v589_v24 = vshll.u32 %v1502_v7, %v580_v1  ;;  %v590_v42 = vshrl.u32 %v1503_v9, %v1858_v21  ;;  %v585_v51 = vor.u32 %v584_v16, %v583_v44  ;;  %v595_v15 = vshll.u32 %v1504_v11, %v580_v1 }
  0x8a   :  { %v391_v60 = vmul.f32 %v390_v13, %v386_v25  ;;  %v398_v27 = vmul.f32 %v397_v62, %v386_v25  ;;  %v1882_v52 = vsub.s32 %v510_v63, %v513_v47  ;;  %v596_v53 = vshrl.u32 %v1505_v20, %v1858_v21 }
  0x8b   :  { %v588_v55 = vor.u32 %v587_v43, %v586_v59  ;;  %v594_v12 = vor.u32 %v593_v33, %v592_v29  ;;  %vm598_vm0 = vcmp.lt.s32.totalorder %v1877_v58, 1  ;;  %vm414_vm1 = vcmp.lt.s32.totalorder %v1547_v36, 0 }
  0x8c   :  { %v392_v54 = vadd.f32 1.0, %v391_v60  ;;  %v399_v49 = vadd.f32 1.0, %v398_v27  ;;  %vm515_vm15 = vcmp.lt.s32.totalorder %v1882_v52, 0  ;;  %v516_v23 = vsub.s32 0, %v1882_v52 }
  0x8d   :  { %v597_v25 = vor.u32 %v596_v53, %v595_v15  ;;  %v591_v31 = vor.u32 %v590_v42, %v589_v24  ;;  %vm601_vm2 = vcmp.lt.s32.totalorder %v1877_v58, 4  ;;  %vm599_vm3 = vcmp.lt.s32.totalorder %v1877_v58, 2 }
  0x8e   :  { %v400_v57 = vmul.f32 %v399_v49, %v384_v8  ;;  %v408_v18 = vxor.u32 2147483648, %v392_v54  ;;  %v517_v6 = vsel %vm515_vm15, %v516_v23, %v1882_v52  ;;  %vm600_vm4 = vcmp.lt.s32.totalorder %v1877_v58, 3 }
  0x8f   :  { %v1895_v10 = vshll.u32 %v574_v61, 8  ;;  %v518_v1 = vclz %v517_v6  ;;  %v606_v8 = vsel %vm598_vm0, %v585_v51, %v588_v55  ;;  %v506_v2 = vadd.s32 %v1833_v46, %v1830_v0 }
  0x90   :  { %v405_v56 = vxor.u32 2147483648, %v400_v57  ;;  %v409_v63 = vsel %vm407_vm11, %v408_v18, %v400_v57  ;;  %v607_v17 = vsel %vm601_vm2, %v594_v12, 920167782  ;;  %v611_v19 = vsel %vm601_vm2, %v597_v25, 1326507024 }
  0x91   :  { %v1378_v34 = vadd.s32 4294967169, %v724_v45  ;;  %v1373_v22 = vadd.s32 4294967294, %v518_v1  ;;  %v608_v26 = vsel %vm600_vm4, %v591_v31, %v607_v17  ;;  %v610_v44 = vsel %vm598_vm0, %v588_v55, %v591_v31 }
  0x92   :  { %v406_v30 = vsel %vm404_vm12, %v392_v54, %v405_v56  ;;  %v536_v46 = vsub.s32 4, %v1864_v28  ;;  %v609_v16 = vsel %vm599_vm3, %v606_v8, %v608_v26  ;;  %v612_v59 = vsel %vm600_vm4, %v594_v12, %v611_v19 }
  0x93   :  { %v410_v0 = vsel %vm403_vm13, %v406_v30, %v409_v63  ;;  %vm1374_vm5 = vcmp.lt.s32.totalorder %v1373_v22, 0  ;;  %v615_v13 = vand.u32 65535, %v1895_v10  ;;  %v616_v62 = vshrl.u32 %v1895_v10, 16 }
  0x94   :  { %v411_v29 = vsel %vm401_vm14, nan, %v410_v0  ;;  %v521_v43 = vsel %vm1374_vm5, 0, %v1373_v22  ;;  %v582_v14 = vshrl.u32 %v1500_v3, %v1858_v21  ;;  %v613_v33 = vsel %vm599_vm3, %v610_v44, %v612_v59 }
  0x95   :  { %v640_v47 = vshrl.u32 %v609_v16, 16  ;;  %1337 = vst [vmem:[#allocation9 + $0x8] sm:$0xff] %v411_v29  ;;  %v522_v61 = vsub.s32 32, %v521_v43  ;;  %v523_v45 = vshll.u32 %v1882_v52, %v521_v43  ;;  %v526_v60 = vsub.s32 4294967266, %v521_v43 }
  0x96   :  { %v639_v35 = vand.u32 65535, %v609_v16  ;;  %v1932_v27 = vsel %vm414_vm1, %v536_v46, %v1864_v28  ;;  %v617_v24 = vand.u32 65535, %v613_v33  ;;  %v618_v42 = vshrl.u32 %v613_v33, 16 }
  0x97   :  { %v730_v15 = vadd.s32 1, %v1378_v34  ;;  %v524_v53 = vshrl.u32 %v506_v2, %v522_v61  ;;  %v527_v21 = vadd.s32 127, %v526_v60  ;;  %v603_v54 = vsel %vm601_vm2, %v591_v31, 2102212464 }
  0x98   :  { %v642_v49 = vmul.u32 %v640_v47, %v615_v13  ;;  %v602_v12 = vsel %vm598_vm0, %v582_v14, %v585_v51  ;;  %v619_v52 = vmul.u32 %v617_v24, %v615_v13  ;;  %v620_v23 = vmul.u32 %v618_v42, %v615_v13 }
  0x99   :  { %v621_v25 = vmul.u32 %v617_v24, %v616_v62  ;;  %vm1940_vm6 = vcmp.le.f32.partialorder %v412_v48, 0.7853982  ;;  %v525_v57 = vor.u32 %v524_v53, %v523_v45  ;;  %v528_v18 = vshll.u32 %v527_v21, 23 }
  0x9a   :  { %v641_v6 = vmul.u32 %v639_v35, %v615_v13  ;;  %v643_v56 = vmul.u32 %v639_v35, %v616_v62  ;;  %v604_v31 = vsel %vm600_vm4, %v588_v55, %v603_v54  ;;  %v622_v63 = vmul.u32 %v618_v42, %v616_v62 }
  0x9b   :  { %v623_v1 = vshll.u32 %v620_v23, 16  ;;  %v625_v8 = vshll.u32 %v621_v25, 16  ;;  %v529_v51 = vor.u32 4788187, %v528_v18  ;;  %v532_v2 = vcvt.s32.f32 %v525_v57 }
  0x9c   :  { %v644_v17 = vmul.u32 %v640_v47, %v616_v62  ;;  %v645_v19 = vshll.u32 %v642_v49, 16  ;;  %v624_v34 = vshrl.u32 %v620_v23, 16  ;;  %v647_v30 = vshll.u32 %v643_v56, 16 }
  0x9d   :  { %vm627_vm7 = vc.u32 %v619_v52, %v623_v1  ;;  %v629_v48 = vadd.s32 %v623_v1, %v619_v52  ;;  %v530_v22 = vand.u32 2147483647, %v529_v51  ;;  %v646_v46 = vshrl.u32 %v642_v49, 16 }
  0x9e   :  { %v628_v26 = vsel %vm627_vm7, 1, %v1506_v32  ;;  %vm649_vm8 = vc.u32 %v641_v6, %v645_v19  ;;  %v651_v44 = vadd.s32 %v645_v19, %v641_v6  ;;  %v626_v13 = vshrl.u32 %v621_v25, 16 }
  0x9f   :  { %v630_v0 = vadd.s32 %v628_v26, %v622_v63  ;;  %vm631_vm9 = vc.u32 %v629_v48, %v625_v8  ;;  %v650_v55 = vsel %vm649_vm8, 1, %v1506_v32  ;;  %v533_v16 = vmul.f32 %v532_v2, %v530_v22 }
  0xa0   :  { %v632_v59 = vsel %vm631_vm9, 1, %v1506_v32  ;;  %v652_v29 = vadd.s32 %v650_v55, %v644_v17  ;;  %vm653_vm10 = vc.u32 %v651_v44, %v647_v30  ;;  %vm731_vm11 = vcmp.gt.s32.totalorder %v730_v15, 0 }
  0xa1   :  { %v634_v62 = vadd.s32 %v632_v59, %v630_v0  ;;  %v654_v43 = vsel %vm653_vm10, 1, %v1506_v32  ;;  %v534_v14 = vxor.u32 2147483648, %v533_v16  ;;  %v648_v33 = vshrl.u32 %v643_v56, 16 }
  0xa2   :  { %v656_v47 = vadd.s32 %v654_v43, %v652_v29  ;;  %v732_v61 = vsel %vm731_vm11, %v730_v15, 0  ;;  %v605_v45 = vsel %vm599_vm3, %v602_v12, %v604_v31  ;;  %v1952_v35 = vadd.s32 %v651_v44, %v647_v30 }
  0xa3   :  { %v635_v60 = vadd.s32 %v634_v62, %v624_v34  ;;  %v734_v24 = vand.u32 31, %v732_v61  ;;  %v535_v42 = vsel %vm414_vm1, %v534_v14, %v533_v16  ;;  %v727_v15 = vand.u32 8388607, %v720_v50 }
  0xa4   :  { %v657_v53 = vadd.s32 %v656_v47, %v646_v46  ;;  %v538_v21 = vsel %vm1940_vm6, %v1547_v36, %v535_v42  ;;  %v539_v58 = vsel %vm1940_vm6, 0, %v1932_v27  ;;  %v659_v23 = vmul.u32 %v1895_v10, %v605_v45 }
  0xa5   :  { %v1959_v54 = vadd.s32 %v635_v60, %v626_v13  ;;  %v1963_v49 = vsub.s32 32, %v734_v24  ;;  %v540_v12 = vmul.f32 %v538_v21, %v538_v21  ;;  %v737_v25 = vshll.u32 %v1500_v3, %v734_v24 }
  0xa6   :  { %v658_v52 = vadd.s32 %v657_v53, %v648_v33  ;;  %v740_v18 = vshll.u32 %v1501_v5, %v734_v24  ;;  %v743_v28 = vshll.u32 %v1502_v7, %v734_v24  ;;  %v746_v63 = vshll.u32 %v1503_v9, %v734_v24 }
  0xa7   :  { %vm661_vm12 = vc.u32 %v1959_v54, %v1952_v35  ;;  %v738_v57 = vshrl.u32 %v1501_v5, %v1963_v49  ;;  %v541_v6 = vmul.f32 -0.001358992, %v540_v12  ;;  %v548_v56 = vmul.f32 -0.00019511016, %v540_v12 }
  0xa8   :  { %v662_v31 = vadd.s32 1, %v658_v52  ;;  %v741_v27 = vshrl.u32 %v1502_v7, %v1963_v49  ;;  %v744_v10 = vshrl.u32 %v1503_v9, %v1963_v49  ;;  %v747_v1 = vshrl.u32 %v1504_v11, %v1963_v49 }
  0xa9   :  { %v542_v8 = vadd.f32 0.041655596, %v541_v6  ;;  %v549_v51 = vadd.f32 0.008332121, %v548_v56  ;;  %v1983_v17 = vshrl.u32 %v732_v61, 5  ;;  %v556_v19 = vand.u32 3, %v539_v58 }
  0xaa   :  { %v663_v2 = vsel %vm661_vm12, %v662_v31, %v658_v52  ;;  %v728_v48 = vor.u32 8388608, %v727_v15  ;;  %v739_v30 = vor.u32 %v738_v57, %v737_v25  ;;  %v1985_v44 = vor.u32 %v741_v27, %v740_v18 }
  0xab   :  { %v664_v34 = vadd.s32 %v663_v2, %v659_v23  ;;  %v543_v22 = vmul.f32 %v542_v8, %v540_v12  ;;  %v550_v26 = vmul.f32 %v549_v51, %v540_v12  ;;  %v749_v0 = vshll.u32 %v1504_v11, %v734_v24 }
  0xac   :  { %v745_v55 = vor.u32 %v744_v10, %v743_v28  ;;  %v748_v16 = vor.u32 %v747_v1, %v746_v63  ;;  %v750_v59 = vshrl.u32 %v1505_v20, %v1963_v49  ;;  %vm752_vm13 = vcmp.lt.s32.totalorder %v1983_v17, 1 }
  0xad   :  { %v665_v46 = vadd.s32 536870912, %v664_v34  ;;  %v544_v29 = vadd.f32 -0.4999988, %v543_v22  ;;  %v551_v13 = vadd.f32 -0.16666654, %v550_v26  ;;  %vm755_vm14 = vcmp.lt.s32.totalorder %v1983_v17, 4 }
  0xae   :  { %vm555_vm15 = vweird.f32 %v1547_v36  ;;  %v751_v43 = vor.u32 %v750_v59, %v749_v0  ;;  %vm754_vm0 = vcmp.lt.s32.totalorder %v1983_v17, 3  ;;  %v1996_v14 = vshll.u32 %v728_v48, 8 }
  0xaf   :  { %v1993_v62 = vshrl.u32 %v665_v46, 30  ;;  %v545_v33 = vmul.f32 %v544_v29, %v540_v12  ;;  %v552_v47 = vmul.f32 %v551_v13, %v540_v12  ;;  %vm557_vm1 = vcmp.lt.s32.totalorder %v556_v19, 2 }
  0xb0   :  { %vm558_vm2 = vcmp.eq.s32.totalorder %v556_v19, 0  ;;  %vm753_vm3 = vcmp.lt.s32.totalorder %v1983_v17, 2  ;;  %v760_v45 = vsel %vm752_vm13, %v739_v30, %v1985_v44  ;;  %v761_v60 = vsel %vm755_vm14, %v748_v16, 920167782 }
  0xb1   :  { %v667_v61 = vshll.u32 %v1993_v62, 30  ;;  %v546_v24 = vadd.f32 1.0, %v545_v33  ;;  %v553_v42 = vadd.f32 1.0, %v552_v47  ;;  %v762_v53 = vsel %vm754_vm0, %v745_v55, %v761_v60 }
  0xb2   :  { %v764_v15 = vsel %vm752_vm13, %v1985_v44, %v745_v55  ;;  %vm561_vm4 = vcmp.eq.s32.totalorder %v556_v19, 2  ;;  %v765_v12 = vsel %vm755_vm14, %v751_v43, 1326507024  ;;  %v769_v52 = vand.u32 65535, %v1996_v14 }
  0xb3   :  { %v668_v58 = vsub.s32 %v664_v34, %v667_v61  ;;  %v554_v23 = vmul.f32 %v553_v42, %v538_v21  ;;  %v562_v25 = vxor.u32 2147483648, %v546_v24  ;;  %v763_v57 = vsel %vm753_vm3, %v760_v45, %v762_v53 }
  0xb4   :  { %v766_v18 = vsel %vm754_vm0, %v748_v16, %v765_v12  ;;  %v770_v31 = vshrl.u32 %v1996_v14, 16  ;;  %v736_v21 = vshrl.u32 %v1500_v3, %v1963_v49  ;;  %v793_v8 = vand.u32 65535, %v763_v57 }
  0xb5   :  { %vm669_vm5 = vcmp.lt.s32.totalorder %v668_v58, 0  ;;  %v670_v6 = vsub.s32 0, %v668_v58  ;;  %v767_v56 = vsel %vm753_vm3, %v764_v15, %v766_v18  ;;  %v559_v27 = vxor.u32 2147483648, %v554_v23 }
  0xb6   :  { %v563_v28 = vsel %vm561_vm4, %v562_v25, %v554_v23  ;;  %v771_v10 = vand.u32 65535, %v767_v56  ;;  %v772_v63 = vshrl.u32 %v767_v56, 16  ;;  %v794_v51 = vshrl.u32 %v763_v57, 16 }
  0xb7   :  { %v671_v1 = vsel %vm669_vm5, %v670_v6, %v668_v58  ;;  %v560_v2 = vsel %vm558_vm2, %v546_v24, %v559_v27  ;;  %v660_v59 = vadd.s32 %v1952_v35, %v1959_v54  ;;  %v756_v49 = vsel %vm752_vm13, %v736_v21, %v739_v30 }
  0xb8   :  { %v672_v34 = vclz %v671_v1  ;;  %v773_v48 = vmul.u32 %v771_v10, %v769_v52  ;;  %v774_v22 = vmul.u32 %v772_v63, %v769_v52  ;;  %v564_v26 = vsel %vm557_vm1, %v560_v2, %v563_v28 }
  0xb9   :  { %v775_v0 = vmul.u32 %v771_v10, %v770_v31  ;;  %v796_v46 = vmul.u32 %v794_v51, %v769_v52  ;;  %v565_v16 = vsel %vm555_vm15, nan, %v564_v26  ;;  %v757_v43 = vsel %vm755_vm14, %v745_v55, 2102212464 }
  0xba   :  { %v1376_v29 = vadd.s32 4294967294, %v672_v34  ;;  %v777_v13 = vshll.u32 %v774_v22, 16  ;;  %v776_v33 = vmul.u32 %v772_v63, %v770_v31  ;;  %1338 = vst [vmem:[#allocation9 + $0x10] sm:$0xff] %v565_v16  ;;  %v795_v19 = vmul.u32 %v793_v8, %v769_v52 }
  0xbb   :  { %v779_v47 = vshll.u32 %v775_v0, 16  ;;  %v797_v61 = vmul.u32 %v793_v8, %v770_v31  ;;  %v799_v35 = vshll.u32 %v796_v46, 16  ;;  %v758_v30 = vsel %vm754_vm0, %v1985_v44, %v757_v43 }
  0xbc   :  { %vm1377_vm6 = vcmp.lt.s32.totalorder %v1376_v29, 0  ;;  %vm781_vm7 = vc.u32 %v773_v48, %v777_v13  ;;  %v783_v60 = vadd.s32 %v777_v13, %v773_v48  ;;  %v778_v55 = vshrl.u32 %v774_v22, 16 }
  0xbd   :  { %v675_v36 = vsel %vm1377_vm6, 0, %v1376_v29  ;;  %v782_v45 = vsel %vm781_vm7, 1, %v1506_v32  ;;  %v798_v15 = vmul.u32 %v794_v51, %v770_v31  ;;  %v801_v25 = vshll.u32 %v797_v61, 16 }
  0xbe   :  { %v676_v54 = vsub.s32 32, %v675_v36  ;;  %v677_v24 = vshll.u32 %v668_v58, %v675_v36  ;;  %v680_v42 = vsub.s32 4294967266, %v675_v36  ;;  %v784_v53 = vadd.s32 %v782_v45, %v776_v33 }
  0xbf   :  { %vm785_vm8 = vc.u32 %v783_v60, %v779_v47  ;;  %v690_v57 = vsub.s32 4, %v1993_v62  ;;  %vm803_vm9 = vc.u32 %v795_v19, %v799_v35  ;;  %v805_v6 = vadd.s32 %v799_v35, %v795_v19 }
  0xc0   :  { %v678_v12 = vshrl.u32 %v660_v59, %v676_v54  ;;  %v681_v23 = vadd.s32 127, %v680_v42  ;;  %v786_v52 = vsel %vm785_vm8, 1, %v1506_v32  ;;  %v780_v27 = vshrl.u32 %v775_v0, 16 }
  0xc1   :  { %v788_v18 = vadd.s32 %v786_v52, %v784_v53  ;;  %v804_v28 = vsel %vm803_vm9, 1, %v1506_v32  ;;  %v800_v10 = vshrl.u32 %v796_v46, 16  ;;  %vm807_vm10 = vc.u32 %v805_v6, %v801_v25 }
  0xc2   :  { %v679_v58 = vor.u32 %v678_v12, %v677_v24  ;;  %v682_v56 = vshll.u32 %v681_v23, 23  ;;  %v806_v63 = vadd.s32 %v804_v28, %v798_v15  ;;  %v808_v21 = vsel %vm807_vm10, 1, %v1506_v32 }
  0xc3   :  { %v789_v44 = vadd.s32 %v788_v18, %v778_v55  ;;  %v877_v8 = vand.u32 2139095040, %v1553_v39  ;;  %v802_v51 = vshrl.u32 %v797_v61, 16  ;;  %v809_v22 = vadd.s32 %v805_v6, %v801_v25 }
  0xc4   :  { %v683_v31 = vor.u32 4788187, %v682_v56  ;;  %v686_v1 = vcvt.s32.f32 %v679_v58  ;;  %v810_v2 = vadd.s32 %v808_v21, %v806_v63  ;;  %vm568_vm11 = vcmp.lt.s32.totalorder %v1549_v37, 0 }
  0xc5   :  { %v790_v48 = vadd.s32 %v789_v44, %v780_v27  ;;  %v878_v26 = vshrl.u32 %v877_v8, 23  ;;  %v759_v0 = vsel %vm753_vm3, %v756_v49, %v758_v30  ;;  %v691_v59 = vsel %vm568_vm11, %v690_v57, %v1993_v62 }
  0xc6   :  { %v684_v34 = vand.u32 2147483647, %v683_v31  ;;  %v811_v46 = vadd.s32 %v810_v2, %v800_v10  ;;  %v874_v29 = vand.u32 2147483647, %v1553_v39  ;;  %vm567_vm12 = vcmp.le.f32.partialorder %v566_v4, 0.7853982 }
  0xc7   :  { %v1381_v13 = vadd.s32 4294967169, %v878_v26  ;;  %v813_v47 = vmul.u32 %v1996_v14, %v759_v0  ;;  %vm815_vm13 = vc.u32 %v790_v48, %v809_v22  ;;  %v693_v61 = vsel %vm567_vm12, 0, %v691_v59 }
  0xc8   :  { %v687_v16 = vmul.f32 %v686_v1, %v684_v34  ;;  %v812_v43 = vadd.s32 %v811_v46, %v802_v51  ;;  %v881_v49 = vand.u32 8388607, %v874_v29  ;;  %v2056_v35 = vand.u32 3, %v693_v61 }
  0xc9   :  { %v884_v19 = vadd.s32 1, %v1381_v13  ;;  %v2058_v54 = vadd.s32 %v809_v22, %v790_v48  ;;  %v1028_v42 = vand.u32 2147483647, %v1555_v40  ;;  %v1031_v30 = vand.u32 2139095040, %v1555_v40 }
  0xca   :  { %v688_v33 = vxor.u32 2147483648, %v687_v16  ;;  %v816_v36 = vadd.s32 1, %v812_v43  ;;  %v882_v12 = vor.u32 8388608, %v881_v49  ;;  %vm715_vm15 = vcmp.eq.s32.totalorder %v2056_v35, 2 }
  0xcb   :  { %vm885_vm14 = vcmp.gt.s32.totalorder %v884_v19, 0  ;;  %v1032_v21 = vshrl.u32 %v1031_v30, 23  ;;  %vm712_vm0 = vcmp.eq.s32.totalorder %v2056_v35, 0  ;;  %vm711_vm2 = vcmp.lt.s32.totalorder %v2056_v35, 2 }
  0xcc   :  { %v689_v17 = vsel %vm568_vm11, %v688_v33, %v687_v16  ;;  %v817_v45 = vsel %vm815_vm13, %v816_v36, %v812_v43  ;;  %v886_v60 = vsel %vm885_vm14, %v884_v19, 0  ;;  %v2086_v2 = vshll.u32 %v882_v12, 8 }
  0xcd   :  { %v2052_v62 = vsel %vm567_vm12, %v1549_v37, %v689_v17  ;;  %v818_v14 = vadd.s32 %v817_v45, %v813_v47  ;;  %v888_v24 = vand.u32 31, %v886_v60  ;;  %v2062_v23 = vshrl.u32 %v886_v60, 5 }
  0xce   :  { %v694_v4 = vmul.f32 %v2052_v62, %v2052_v62  ;;  %vm709_vm3 = vweird.f32 %v1549_v37  ;;  %vm722_vm5 = vcmp.lt.s32.totalorder %v1551_v38, 0  ;;  %v1384_v19 = vadd.s32 4294967169, %v1032_v21 }
  0xcf   :  { %v819_v15 = vadd.s32 536870912, %v818_v14  ;;  %v2064_v52 = vsub.s32 32, %v888_v24  ;;  %v891_v25 = vshll.u32 %v1500_v3, %v888_v24  ;;  %v894_v57 = vshll.u32 %v1501_v5, %v888_v24 }
  0xd0   :  { %v695_v55 = vmul.f32 -0.001358992, %v694_v4  ;;  %v702_v53 = vmul.f32 -0.00019511016, %v694_v4  ;;  %v897_v56 = vshll.u32 %v1502_v7, %v888_v24  ;;  %v900_v10 = vshll.u32 %v1503_v9, %v888_v24 }
  0xd1   :  { %v2068_v58 = vshrl.u32 %v819_v15, 30  ;;  %v892_v27 = vshrl.u32 %v1501_v5, %v2064_v52  ;;  %v895_v28 = vshrl.u32 %v1502_v7, %v2064_v52  ;;  %v898_v44 = vshrl.u32 %v1503_v9, %v2064_v52 }
  0xd2   :  { %v696_v18 = vadd.f32 0.041655596, %v695_v55  ;;  %v703_v6 = vadd.f32 0.008332121, %v702_v53  ;;  %v901_v51 = vshrl.u32 %v1504_v11, %v2064_v52  ;;  %vm906_vm1 = vcmp.lt.s32.totalorder %v2062_v23, 1 }
  0xd3   :  { %v821_v1 = vshll.u32 %v2068_v58, 30  ;;  %v2081_v8 = vor.u32 %v892_v27, %v891_v25  ;;  %v2091_v26 = vor.u32 %v895_v28, %v894_v57  ;;  %v899_v0 = vor.u32 %v898_v44, %v897_v56 }
  0xd4   :  { %v697_v63 = vmul.f32 %v696_v18, %v694_v4  ;;  %v704_v31 = vmul.f32 %v703_v6, %v694_v4  ;;  %v902_v46 = vor.u32 %v901_v51, %v900_v10  ;;  %v903_v16 = vshll.u32 %v1504_v11, %v888_v24 }
  0xd5   :  { %v2089_v22 = vsub.s32 %v818_v14, %v821_v1  ;;  %v904_v59 = vshrl.u32 %v1505_v20, %v2064_v52  ;;  %vm908_vm6 = vcmp.lt.s32.totalorder %v2062_v23, 3  ;;  %vm909_vm7 = vcmp.lt.s32.totalorder %v2062_v23, 4 }
  0xd6   :  { %v698_v34 = vadd.f32 -0.4999988, %v697_v63  ;;  %v705_v48 = vadd.f32 -0.16666654, %v704_v31  ;;  %vm907_vm8 = vcmp.lt.s32.totalorder %v2062_v23, 2  ;;  %v914_v45 = vsel %vm906_vm1, %v2081_v8, %v2091_v26 }
  0xd7   :  { %vm823_vm4 = vcmp.lt.s32.totalorder %v2089_v22, 0  ;;  %v824_v33 = vsub.s32 0, %v2089_v22  ;;  %v905_v47 = vor.u32 %v904_v59, %v903_v16  ;;  %v915_v60 = vsel %vm909_vm7, %v902_v46, 920167782 }
  0xd8   :  { %v699_v13 = vmul.f32 %v698_v34, %v694_v4  ;;  %v706_v43 = vmul.f32 %v705_v48, %v694_v4  ;;  %v2112_v4 = vand.u32 8388607, %v1028_v42  ;;  %v916_v30 = vsel %vm908_vm6, %v899_v0, %v915_v60 }
  0xd9   :  { %v825_v17 = vsel %vm823_vm4, %v824_v33, %v2089_v22  ;;  %v923_v55 = vand.u32 65535, %v2086_v2  ;;  %vm2120_vm9 = vcmp.le.f32.partialorder %v720_v50, 0.7853982  ;;  %v917_v12 = vsel %vm907_vm8, %v914_v45, %v916_v30 }
  0xda   :  { %v700_v61 = vadd.f32 1.0, %v699_v13  ;;  %v707_v36 = vadd.f32 1.0, %v706_v43  ;;  %v826_v49 = vclz %v825_v17  ;;  %v1038_v25 = vadd.s32 1, %v1384_v19 }
  0xdb   :  { %v844_v6 = vsub.s32 4, %v2068_v58  ;;  %v919_v50 = vsel %vm909_vm7, %v905_v47, 1326507024  ;;  %v924_v27 = vshrl.u32 %v2086_v2, 16  ;;  %v947_v28 = vand.u32 65535, %v917_v12 }
  0xdc   :  { %v708_v14 = vmul.f32 %v707_v36, %v2052_v62  ;;  %v716_v24 = vxor.u32 2147483648, %v700_v61  ;;  %v1379_v15 = vadd.s32 4294967294, %v826_v49  ;;  %v918_v62 = vsel %vm906_vm1, %v2091_v26, %v899_v0 }
  0xdd   :  { %v920_v56 = vsel %vm908_vm6, %v902_v46, %v919_v50  ;;  %v948_v31 = vshrl.u32 %v917_v12, 16  ;;  %v845_v46 = vsel %vm722_vm5, %v844_v6, %v2068_v58  ;;  %v890_v16 = vshrl.u32 %v1500_v3, %v2064_v52 }
  0xde   :  { %v713_v57 = vxor.u32 2147483648, %v708_v14  ;;  %v717_v18 = vsel %vm715_vm15, %v716_v24, %v708_v14  ;;  %vm1380_vm10 = vcmp.lt.s32.totalorder %v1379_v15, 0  ;;  %v921_v63 = vsel %vm907_vm8, %v918_v62, %v920_v56 }
  0xdf   :  { %v829_v10 = vsel %vm1380_vm10, 0, %v1379_v15  ;;  %vm1039_vm11 = vcmp.gt.s32.totalorder %v1038_v25, 0  ;;  %v925_v35 = vand.u32 65535, %v921_v63  ;;  %v926_v43 = vshrl.u32 %v921_v63, 16 }
  0xe0   :  { %v714_v44 = vsel %vm712_vm0, %v700_v61, %v713_v57  ;;  %v830_v21 = vsub.s32 32, %v829_v10  ;;  %v831_v51 = vshll.u32 %v2089_v22, %v829_v10  ;;  %v834_v34 = vsub.s32 4294967266, %v829_v10 }
  0xe1   :  { %v718_v1 = vsel %vm711_vm2, %v714_v44, %v717_v18  ;;  %v911_v22 = vsel %vm909_vm7, %v899_v0, 2102212464  ;;  %v949_v33 = vmul.u32 %v947_v28, %v923_v55  ;;  %v950_v37 = vmul.u32 %v948_v31, %v923_v55 }
  0xe2   :  { %v719_v48 = vsel %vm709_vm3, nan, %v718_v1  ;;  %v832_v59 = vshrl.u32 %v2058_v54, %v830_v21  ;;  %v835_v13 = vadd.s32 127, %v834_v34  ;;  %v951_v47 = vmul.u32 %v947_v28, %v924_v27 }
  0xe3   :  { %1339 = vst [vmem:[#allocation9 + $0x18] sm:$0xff] %v719_v48  ;;  %v927_v36 = vmul.u32 %v925_v35, %v923_v55  ;;  %v928_v58 = vmul.u32 %v926_v43, %v923_v55  ;;  %v847_v52 = vsel %vm2120_vm9, 0, %v845_v46  ;;  %v929_v17 = vmul.u32 %v925_v35, %v924_v27 }
  0xe4   :  { %v833_v19 = vor.u32 %v832_v59, %v831_v51  ;;  %v836_v61 = vshll.u32 %v835_v13, 23  ;;  %v952_v49 = vmul.u32 %v948_v31, %v924_v27  ;;  %v953_v54 = vshll.u32 %v950_v37, 16 }
  0xe5   :  { %v930_v14 = vmul.u32 %v926_v43, %v924_v27  ;;  %v931_v24 = vshll.u32 %v928_v58, 16  ;;  %v910_v0 = vsel %vm906_vm1, %v890_v16, %v2081_v8  ;;  %v912_v30 = vsel %vm908_vm6, %v2091_v26, %v911_v22 }
  0xe6   :  { %v837_v45 = vor.u32 4788187, %v836_v61  ;;  %v840_v60 = vcvt.s32.f32 %v833_v19  ;;  %v933_v15 = vshll.u32 %v929_v17, 16  ;;  %v955_v55 = vshll.u32 %v951_v47, 16 }
  0xe7   :  { %vm935_vm12 = vc.u32 %v927_v36, %v931_v24  ;;  %v937_v62 = vadd.s32 %v931_v24, %v927_v36  ;;  %vm957_vm13 = vc.u32 %v949_v33, %v953_v54  ;;  %v932_v57 = vshrl.u32 %v928_v58, 16 }
  0xe8   :  { %v838_v12 = vand.u32 2147483647, %v837_v45  ;;  %v936_v18 = vsel %vm935_vm12, 1, %v1506_v32  ;;  %v958_v6 = vsel %vm957_vm13, 1, %v1506_v32  ;;  %v959_v50 = vadd.s32 %v953_v54, %v949_v33 }
  0xe9   :  { %v938_v27 = vadd.s32 %v936_v18, %v930_v14  ;;  %vm939_vm14 = vc.u32 %v937_v62, %v933_v15  ;;  %v960_v8 = vadd.s32 %v958_v6, %v952_v49  ;;  %v954_v44 = vshrl.u32 %v950_v37, 16 }
  0xea   :  { %v841_v56 = vmul.f32 %v840_v60, %v838_v12  ;;  %v940_v28 = vsel %vm939_vm14, 1, %v1506_v32  ;;  %vm961_vm15 = vc.u32 %v959_v50, %v955_v55  ;;  %v1040_v26 = vsel %vm1039_vm11, %v1038_v25, 0 }
  0xeb   :  { %v934_v63 = vshrl.u32 %v929_v17, 16  ;;  %v942_v31 = vadd.s32 %v940_v28, %v938_v27  ;;  %v962_v1 = vsel %vm961_vm15, 1, %v1506_v32  ;;  %v913_v21 = vsel %vm907_vm8, %v910_v0, %v912_v30 }
  0xec   :  { %v842_v10 = vxor.u32 2147483648, %v841_v56  ;;  %v956_v51 = vshrl.u32 %v951_v47, 16  ;;  %v964_v34 = vadd.s32 %v962_v1, %v960_v8  ;;  %v1042_v48 = vand.u32 31, %v1040_v26 }
  0xed   :  { %v943_v16 = vadd.s32 %v942_v31, %v932_v57  ;;  %v2171_v59 = vadd.s32 %v959_v50, %v955_v55  ;;  %v1036_v13 = vor.u32 8388608, %v2112_v4  ;;  %v2177_v43 = vshrl.u32 %v1040_v26, 5 }
  0xee   :  { %v843_v46 = vsel %vm722_vm5, %v842_v10, %v841_v56  ;;  %v965_v35 = vadd.s32 %v964_v34, %v954_v44  ;;  %v2179_v23 = vsub.s32 32, %v1042_v48  ;;  %v2181_v33 = vand.u32 3, %v847_v52 }
  0xef   :  { %v846_v25 = vsel %vm2120_vm9, %v1551_v38, %v843_v46  ;;  %v2183_v37 = vadd.s32 %v943_v16, %v934_v63  ;;  %v967_v47 = vmul.u32 %v2086_v2, %v913_v21  ;;  %v1045_v61 = vshll.u32 %v1500_v3, %v1042_v48 }
  0xf0   :  { %v848_v22 = vmul.f32 %v846_v25, %v846_v25  ;;  %v966_v19 = vadd.s32 %v965_v35, %v956_v51  ;;  %v1046_v4 = vshrl.u32 %v1501_v5, %v2179_v23  ;;  %v1048_v53 = vshll.u32 %v1501_v5, %v1042_v48 }
  0xf1   :  { %vm969_vm0 = vc.u32 %v2183_v37, %v2171_v59  ;;  %v1049_v52 = vshrl.u32 %v1502_v7, %v2179_v23  ;;  %v1051_v49 = vshll.u32 %v1502_v7, %v1042_v48  ;;  %v1052_v2 = vshrl.u32 %v1503_v9, %v2179_v23 }
  0xf2   :  { %v849_v36 = vmul.f32 -0.001358992, %v848_v22  ;;  %v856_v58 = vmul.f32 -0.00019511016, %v848_v22  ;;  %v970_v17 = vadd.s32 1, %v966_v19  ;;  %vm1060_vm1 = vcmp.lt.s32.totalorder %v2177_v43, 1 }
  0xf3   :  { %v1054_v60 = vshll.u32 %v1503_v9, %v1042_v48  ;;  %v1055_v14 = vshrl.u32 %v1504_v11, %v2179_v23  ;;  %v2201_v0 = vor.u32 %v1046_v4, %v1045_v61  ;;  %v1057_v30 = vshll.u32 %v1504_v11, %v1042_v48 }
  0xf4   :  { %v850_v54 = vadd.f32 0.041655596, %v849_v36  ;;  %v857_v45 = vadd.f32 0.008332121, %v856_v58  ;;  %v971_v24 = vsel %vm969_vm0, %v970_v17, %v966_v19  ;;  %v1058_v15 = vshrl.u32 %v1505_v20, %v2179_v23 }
  0xf5   :  { %v972_v62 = vadd.s32 %v971_v24, %v967_v47  ;;  %v2206_v57 = vor.u32 %v1049_v52, %v1048_v53  ;;  %v2208_v18 = vor.u32 %v1052_v2, %v1051_v49  ;;  %v1056_v6 = vor.u32 %v1055_v14, %v1054_v60 }
  0xf6   :  { %v851_v55 = vmul.f32 %v850_v54, %v848_v22  ;;  %v858_v12 = vmul.f32 %v857_v45, %v848_v22  ;;  %v1059_v50 = vor.u32 %v1058_v15, %v1057_v30  ;;  %vm1062_vm2 = vcmp.lt.s32.totalorder %v2177_v43, 3 }
  0xf7   :  { %v973_v8 = vadd.s32 536870912, %v972_v62  ;;  %vm1063_vm3 = vcmp.lt.s32.totalorder %v2177_v43, 4  ;;  %vm1061_vm4 = vcmp.lt.s32.totalorder %v2177_v43, 2  ;;  %v2215_v44 = vshll.u32 %v1036_v13, 8 }
  0xf8   :  { %v852_v56 = vadd.f32 -0.4999988, %v851_v55  ;;  %v859_v27 = vadd.f32 -0.16666654, %v858_v12  ;;  %v1069_v28 = vsel %vm1063_vm3, %v1056_v6, 920167782  ;;  %v1068_v31 = vsel %vm1060_vm1, %v2201_v0, %v2206_v57 }
  0xf9   :  { %v2217_v63 = vshrl.u32 %v973_v8, 30  ;;  %vm865_vm5 = vcmp.lt.s32.totalorder %v2181_v33, 2  ;;  %v1070_v1 = vsel %vm1062_vm2, %v2208_v18, %v1069_v28  ;;  %v1073_v21 = vsel %vm1063_vm3, %v1059_v50, 1326507024 }
  0xfa   :  { %v853_v26 = vmul.f32 %v852_v56, %v848_v22  ;;  %v860_v10 = vmul.f32 %v859_v27, %v848_v22  ;;  %v1072_v46 = vsel %vm1060_vm1, %v2206_v57, %v2208_v18  ;;  %vm869_vm6 = vcmp.eq.s32.totalorder %v2181_v33, 2 }
  0xfb   :  { %v975_v48 = vshll.u32 %v2217_v63, 30  ;;  %v1071_v16 = vsel %vm1061_vm4, %v1068_v31, %v1070_v1  ;;  %v1074_v13 = vsel %vm1062_vm2, %v1056_v6, %v1073_v21  ;;  %v1077_v35 = vand.u32 65535, %v2215_v44 }
  0xfc   :  { %v854_v51 = vadd.f32 1.0, %v853_v26  ;;  %v861_v34 = vadd.f32 1.0, %v860_v10  ;;  %vm866_vm7 = vcmp.eq.s32.totalorder %v2181_v33, 0  ;;  %v1075_v61 = vsel %vm1061_vm4, %v1072_v46, %v1074_v13 }
  0xfd   :  { %v976_v19 = vsub.s32 %v972_v62, %v975_v48  ;;  %v1078_v4 = vshrl.u32 %v2215_v44, 16  ;;  %v1101_v53 = vand.u32 65535, %v1071_v16  ;;  %v1102_v36 = vshrl.u32 %v1071_v16, 16 }
  0xfe   :  { %v862_v22 = vmul.f32 %v861_v34, %v846_v25  ;;  %v870_v47 = vxor.u32 2147483648, %v854_v51  ;;  %vm863_vm9 = vweird.f32 %v1551_v38  ;;  %v1079_v49 = vand.u32 65535, %v1075_v61 }
  0xff   :  { %vm977_vm8 = vcmp.lt.s32.totalorder %v976_v19, 0  ;;  %v978_v17 = vsub.s32 0, %v976_v19  ;;  %v1080_v2 = vshrl.u32 %v1075_v61, 16  ;;  %v1104_v25 = vmul.u32 %v1102_v36, %v1077_v35 }
 0x100   :  { %v867_v58 = vxor.u32 2147483648, %v862_v22  ;;  %v871_v52 = vsel %vm869_vm6, %v870_v47, %v862_v22  ;;  %v1081_v24 = vmul.u32 %v1079_v49, %v1077_v35  ;;  %v1083_v55 = vmul.u32 %v1079_v49, %v1078_v4 }
 0x101   :  { %v979_v45 = vsel %vm977_vm8, %v978_v17, %v976_v19  ;;  %v1082_v30 = vmul.u32 %v1080_v2, %v1077_v35  ;;  %v1103_v12 = vmul.u32 %v1101_v53, %v1077_v35  ;;  %v1107_v62 = vshll.u32 %v1104_v25, 16 }
 0x102   :  { %v868_v54 = vsel %vm866_vm7, %v854_v51, %v867_v58  ;;  %v980_v14 = vclz %v979_v45  ;;  %v1044_v38 = vshrl.u32 %v1500_v3, %v2179_v23  ;;  %v1084_v56 = vmul.u32 %v1080_v2, %v1078_v4 }
 0x103   :  { %v872_v60 = vsel %vm865_vm5, %v868_v54, %v871_v52  ;;  %v1085_v50 = vshll.u32 %v1082_v30, 16  ;;  %v1087_v27 = vshll.u32 %v1083_v55, 16  ;;  %v1105_v8 = vmul.u32 %v1101_v53, %v1078_v4 }
 0x104   :  { %v873_v15 = vsel %vm863_vm9, nan, %v872_v60  ;;  %v1382_v6 = vadd.s32 4294967294, %v980_v14  ;;  %v968_v33 = vadd.s32 %v2171_v59, %v2183_v37  ;;  %v1106_v28 = vmul.u32 %v1102_v36, %v1078_v4 }
 0x105   :  { %1340 = vst [vmem:[#allocation9 + $0x20] sm:$0xff] %v873_v15  ;;  %vm1089_vm11 = vc.u32 %v1081_v24, %v1085_v50  ;;  %v1091_v31 = vadd.s32 %v1085_v50, %v1081_v24  ;;  %vm1111_vm12 = vc.u32 %v1103_v12, %v1107_v62  ;;  %v1065_v23 = vsel %vm1063_vm3, %v2208_v18, 2102212464 }
 0x106   :  { %vm1383_vm10 = vcmp.lt.s32.totalorder %v1382_v6, 0  ;;  %v1090_v10 = vsel %vm1089_vm11, 1, %v1506_v32  ;;  %v1086_v34 = vshrl.u32 %v1082_v30, 16  ;;  %v1109_v46 = vshll.u32 %v1105_v8, 16 }
 0x107   :  { %v983_v26 = vsel %vm1383_vm10, 0, %v1382_v6  ;;  %v1092_v48 = vadd.s32 %v1090_v10, %v1084_v56  ;;  %vm1093_vm13 = vc.u32 %v1091_v31, %v1087_v27  ;;  %v1112_v13 = vsel %vm1111_vm12, 1, %v1506_v32 }
 0x108   :  { %v984_v1 = vsub.s32 32, %v983_v26  ;;  %v985_v21 = vshll.u32 %v976_v19, %v983_v26  ;;  %v988_v51 = vsub.s32 4294967266, %v983_v26  ;;  %v1094_v16 = vsel %vm1093_vm13, 1, %v1506_v32 }
 0x109   :  { %v1064_v35 = vsel %vm1060_vm1, %v1044_v38, %v2201_v0  ;;  %v1096_v22 = vadd.s32 %v1094_v16, %v1092_v48  ;;  %v1113_v47 = vadd.s32 %v1107_v62, %v1103_v12  ;;  %v1114_v19 = vadd.s32 %v1112_v13, %v1106_v28 }
 0x10a   :  { %v986_v59 = vshrl.u32 %v968_v33, %v984_v1  ;;  %v989_v37 = vadd.s32 127, %v988_v51  ;;  %v1088_v18 = vshrl.u32 %v1083_v55, 16  ;;  %v1185_v53 = vand.u32 2139095040, %v1557_v41 }
 0x10b   :  { %v1066_v36 = vsel %vm1062_vm2, %v2206_v57, %v1065_v23  ;;  %v1097_v58 = vadd.s32 %v1096_v22, %v1086_v34  ;;  %v1108_v52 = vshrl.u32 %v1104_v25, 16  ;;  %vm1115_vm14 = vc.u32 %v1113_v47, %v1109_v46 }
 0x10c   :  { %v987_v61 = vor.u32 %v986_v59, %v985_v21  ;;  %v990_v4 = vshll.u32 %v989_v37, 23  ;;  %v1116_v2 = vsel %vm1115_vm14, 1, %v1506_v32  ;;  %v1186_v0 = vshrl.u32 %v1185_v53, 23 }
 0x10d   :  { %v1110_v54 = vshrl.u32 %v1105_v8, 16  ;;  %v1118_v45 = vadd.s32 %v1116_v2, %v1114_v19  ;;  %v2265_v14 = vadd.s32 %v1097_v58, %v1088_v18  ;;  %v2267_v24 = vadd.s32 %v1113_v47, %v1109_v46 }
 0x10e   :  { %v991_v17 = vor.u32 4788187, %v990_v4  ;;  %v994_v49 = vcvt.s32.f32 %v987_v61  ;;  %v1387_v30 = vadd.s32 4294967169, %v1186_v0  ;;  %v1067_v15 = vsel %vm1061_vm4, %v1064_v35, %v1066_v36 }
 0x10f   :  { %v1119_v57 = vadd.s32 %v1118_v45, %v1108_v52  ;;  %v998_v25 = vsub.s32 4, %v2217_v63  ;;  %vm2274_vm15 = vcmp.le.f32.partialorder %v874_v29, 0.7853982  ;;  %vm876_vm0 = vcmp.lt.s32.totalorder %v1553_v39, 0 }
 0x110   :  { %v992_v60 = vand.u32 2147483647, %v991_v17  ;;  %v1192_v12 = vadd.s32 1, %v1387_v30  ;;  %v1121_v38 = vmul.u32 %v2215_v44, %v1067_v15  ;;  %vm1123_vm1 = vc.u32 %v2265_v14, %v2267_v24 }
 0x111   :  { %v1120_v6 = vadd.s32 %v1119_v57, %v1110_v54  ;;  %v1182_v56 = vand.u32 2147483647, %v1557_v41  ;;  %v999_v29 = vsel %vm876_vm0, %v998_v25, %v2217_v63  ;;  %vm1017_vm3 = vweird.f32 %v1553_v39 }
 0x112   :  { %v995_v55 = vmul.f32 %v994_v49, %v992_v60  ;;  %vm1193_vm2 = vcmp.gt.s32.totalorder %v1192_v12, 0  ;;  %v1001_v1 = vsel %vm2274_vm15, 0, %v999_v29  ;;  %vm1030_vm13 = vcmp.lt.s32.totalorder %v1555_v40, 0 }
 0x113   :  { %v1124_v43 = vadd.s32 1, %v1120_v6  ;;  %v1194_v27 = vsel %vm1193_vm2, %v1192_v12, 0  ;;  %v1189_v21 = vand.u32 8388607, %v1182_v56  ;;  %v1018_v61 = vand.u32 3, %v1001_v1 }
 0x114   :  { %v996_v50 = vxor.u32 2147483648, %v995_v55  ;;  %v1196_v33 = vand.u32 31, %v1194_v27  ;;  %v2307_v4 = vshrl.u32 %v1194_v27, 5 }
 0x115   :  { %v1125_v26 = vsel %vm1123_vm1, %v1124_v43, %v1120_v6  ;;  %v1190_v36 = vor.u32 8388608, %v1189_v21  ;;  %vm1019_vm8 = vcmp.lt.s32.totalorder %v1018_v61, 2  ;;  %vm1023_vm10 = vcmp.eq.s32.totalorder %v1018_v61, 2 }
 0x116   :  { %v997_v8 = vsel %vm876_vm0, %v996_v50, %v995_v55  ;;  %v1126_v31 = vadd.s32 %v1125_v26, %v1121_v38  ;;  %v2287_v44 = vsub.s32 32, %v1196_v33  ;;  %v1199_v51 = vshll.u32 %v1500_v3, %v1196_v33 }
 0x117   :  { %v1000_v28 = vsel %vm2274_vm15, %v1553_v39, %v997_v8  ;;  %v1202_v63 = vshll.u32 %v1501_v5, %v1196_v33  ;;  %v1205_v46 = vshll.u32 %v1502_v7, %v1196_v33  ;;  %v1208_v13 = vshll.u32 %v1503_v9, %v1196_v33 }
 0x118   :  { %v1002_v10 = vmul.f32 %v1000_v28, %v1000_v28  ;;  %v1127_v48 = vadd.s32 536870912, %v1126_v31  ;;  %v1200_v59 = vshrl.u32 %v1501_v5, %v2287_v44  ;;  %v1203_v37 = vshrl.u32 %v1502_v7, %v2287_v44 }
 0x119   :  { %v1206_v16 = vshrl.u32 %v1503_v9, %v2287_v44  ;;  %v1209_v19 = vshrl.u32 %v1504_v11, %v2287_v44  ;;  %v1211_v5 = vshll.u32 %v1504_v11, %v1196_v33  ;;  %v1212_v17 = vshrl.u32 %v1505_v20, %v2287_v44 }
 0x11a   :  { %v1003_v23 = vmul.f32 -0.001358992, %v1002_v10  ;;  %v1010_v34 = vmul.f32 -0.00019511016, %v1002_v10  ;;  %v2303_v47 = vshrl.u32 %v1127_v48, 30  ;;  %v2311_v58 = vor.u32 %v1200_v59, %v1199_v51 }
 0x11b   :  { %v2313_v9 = vor.u32 %v1203_v37, %v1202_v63  ;;  %v1210_v52 = vor.u32 %v1209_v19, %v1208_v13  ;;  %v2317_v54 = vor.u32 %v1206_v16, %v1205_v46  ;;  %v1213_v11 = vor.u32 %v1212_v17, %v1211_v5 }
 0x11c   :  { %v1004_v35 = vadd.f32 0.041655596, %v1003_v23  ;;  %v1011_v22 = vadd.f32 0.008332121, %v1010_v34  ;;  %v1129_v7 = vshll.u32 %v2303_v47, 30  ;;  %vm1214_vm4 = vcmp.lt.s32.totalorder %v2307_v4, 1 }
 0x11d   :  { %vm1216_vm5 = vcmp.lt.s32.totalorder %v2307_v4, 3  ;;  %vm1217_vm6 = vcmp.lt.s32.totalorder %v2307_v4, 4  ;;  %vm1215_vm9 = vcmp.lt.s32.totalorder %v2307_v4, 2  ;;  %v2326_v15 = vshll.u32 %v1190_v36, 8 }
 0x11e   :  { %v1005_v18 = vmul.f32 %v1004_v35, %v1002_v10  ;;  %v1012_v53 = vmul.f32 %v1011_v22, %v1002_v10  ;;  %v1130_v0 = vsub.s32 %v1126_v31, %v1129_v7  ;;  %v1223_v20 = vsel %vm1217_vm6, %v1210_v52, 920167782 }
 0x11f   :  { %v1222_v12 = vsel %vm1214_vm4, %v2311_v58, %v2313_v9  ;;  %v1224_v6 = vsel %vm1216_vm5, %v2317_v54, %v1223_v20  ;;  %v1226_v50 = vsel %vm1214_vm4, %v2313_v9, %v2317_v54  ;;  %vm1020_vm11 = vcmp.eq.s32.totalorder %v1018_v61, 0 }
 0x120   :  { %v1006_v49 = vadd.f32 -0.4999988, %v1005_v18  ;;  %v1013_v2 = vadd.f32 -0.16666654, %v1012_v53  ;;  %vm1131_vm7 = vcmp.lt.s32.totalorder %v1130_v0, 0  ;;  %v1132_v30 = vsub.s32 0, %v1130_v0 }
 0x121   :  { %v1227_v27 = vsel %vm1217_vm6, %v1213_v11, 1326507024  ;;  %v1122_v8 = vadd.s32 %v2267_v24, %v2265_v14  ;;  %v1225_v33 = vsel %vm1215_vm9, %v1222_v12, %v1224_v6  ;;  %v1231_v1 = vand.u32 65535, %v2326_v15 }
 0x122   :  { %v1007_v45 = vmul.f32 %v1006_v49, %v1002_v10  ;;  %v1014_v60 = vmul.f32 %v1013_v2, %v1002_v10  ;;  %v1133_v25 = vsel %vm1131_vm7, %v1132_v30, %v1130_v0  ;;  %v1228_v26 = vsel %vm1216_vm5, %v1210_v52, %v1227_v27 }
 0x123   :  { %v1134_v62 = vclz %v1133_v25  ;;  %v1232_v21 = vshrl.u32 %v2326_v15, 16  ;;  %v1255_v63 = vand.u32 65535, %v1225_v33  ;;  %v1256_v34 = vshrl.u32 %v1225_v33, 16 }
 0x124   :  { %v1008_v57 = vadd.f32 1.0, %v1007_v45  ;;  %v1015_v55 = vadd.f32 1.0, %v1014_v60  ;;  %v1198_v60 = vshrl.u32 %v1500_v3, %v2287_v44  ;;  %v1219_v12 = vsel %vm1217_vm6, %v2317_v54, 2102212464 }
 0x125   :  { %v1385_v29 = vadd.s32 4294967294, %v1134_v62  ;;  %v1257_v18 = vmul.u32 %v1255_v63, %v1231_v1  ;;  %v1258_v53 = vmul.u32 %v1256_v34, %v1231_v1  ;;  %v1259_v7 = vmul.u32 %v1255_v63, %v1232_v21 }
 0x126   :  { %v1016_v38 = vmul.f32 %v1015_v55, %v1000_v28  ;;  %v1024_v43 = vxor.u32 2147483648, %v1008_v57  ;;  %v1229_v28 = vsel %vm1215_vm9, %v1226_v50, %v1228_v26  ;;  %v1260_v2 = vmul.u32 %v1256_v34, %v1232_v21 }
 0x127   :  { %vm1386_vm12 = vcmp.lt.s32.totalorder %v1385_v29, 0  ;;  %v1233_v51 = vand.u32 65535, %v1229_v28  ;;  %v1234_v23 = vshrl.u32 %v1229_v28, 16  ;;  %vm2365_vm1 = vcmp.le.f32.partialorder %v1028_v42, 0.7853982 }
 0x128   :  { %v1021_v10 = vxor.u32 2147483648, %v1016_v38  ;;  %v1025_v31 = vsel %vm1023_vm10, %v1024_v43, %v1016_v38  ;;  %v1137_v24 = vsel %vm1386_vm12, 0, %v1385_v29  ;;  %v1262_v54 = vshrl.u32 %v1258_v53, 16 }
 0x129   :  { %v1138_v46 = vsub.s32 32, %v1137_v24  ;;  %v1139_v59 = vshll.u32 %v1130_v0, %v1137_v24  ;;  %v1142_v37 = vsub.s32 4294967266, %v1137_v24  ;;  %v1235_v22 = vmul.u32 %v1233_v51, %v1231_v1 }
 0x12a   :  { %v1022_v14 = vsel %vm1020_vm11, %v1008_v57, %v1021_v10  ;;  %v1236_v19 = vmul.u32 %v1234_v23, %v1231_v1  ;;  %v1237_v5 = vmul.u32 %v1233_v51, %v1232_v21  ;;  %v1238_v17 = vmul.u32 %v1234_v23, %v1232_v21 }
 0x12b   :  { %v1026_v48 = vsel %vm1019_vm8, %v1022_v14, %v1025_v31  ;;  %v1140_v13 = vshrl.u32 %v1122_v8, %v1138_v46  ;;  %v1143_v35 = vadd.s32 127, %v1142_v37  ;;  %v1261_v0 = vshll.u32 %v1258_v53, 16 }
 0x12c   :  { %v1027_v16 = vsel %vm1017_vm3, nan, %v1026_v48  ;;  %v1239_v61 = vshll.u32 %v1236_v19, 16  ;;  %v1241_v49 = vshll.u32 %v1237_v5, 16  ;;  %v1240_v30 = vshrl.u32 %v1236_v19, 16 }
 0x12d   :  { %1341 = vst [vmem:[#allocation9 + $0x28] sm:$0xff] %v1027_v16  ;;  %v1141_v36 = vor.u32 %v1140_v13, %v1139_v59  ;;  %v1144_v52 = vshll.u32 %v1143_v35, 23  ;;  %v1263_v57 = vshll.u32 %v1259_v7, 16  ;;  %vm1265_vm0 = vc.u32 %v1257_v18, %v1261_v0 }
 0x12e   :  { %vm1243_vm14 = vc.u32 %v1235_v22, %v1239_v61  ;;  %v1245_v45 = vadd.s32 %v1239_v61, %v1235_v22  ;;  %v1266_v6 = vsel %vm1265_vm0, 1, %v1506_v32  ;;  %v1267_v50 = vadd.s32 %v1261_v0, %v1257_v18 }
 0x12f   :  { %v1145_v39 = vor.u32 4788187, %v1144_v52  ;;  %v1148_v11 = vcvt.s32.f32 %v1141_v36  ;;  %v1244_v20 = vsel %vm1243_vm14, 1, %v1506_v32  ;;  %v1242_v43 = vshrl.u32 %v1237_v5, 16 }
 0x130   :  { %v1246_v25 = vadd.s32 %v1244_v20, %v1238_v17  ;;  %vm1247_vm15 = vc.u32 %v1245_v45, %v1241_v49  ;;  %v1268_v44 = vadd.s32 %v1266_v6, %v1260_v2  ;;  %v1218_v8 = vsel %vm1214_vm4, %v1198_v60, %v2311_v58 }
 0x131   :  { %v1146_v55 = vand.u32 2147483647, %v1145_v39  ;;  %v1248_v62 = vsel %vm1247_vm15, 1, %v1506_v32  ;;  %vm1269_vm2 = vc.u32 %v1267_v50, %v1263_v57  ;;  %v1220_v33 = vsel %vm1216_vm5, %v2313_v9, %v1219_v12 }
 0x132   :  { %v1250_v3 = vadd.s32 %v1248_v62, %v1246_v25  ;;  %v1270_v10 = vsel %vm1269_vm2, 1, %v1506_v32  ;;  %v1264_v31 = vshrl.u32 %v1259_v7, 16  ;;  %v1271_v21 = vadd.s32 %v1267_v50, %v1263_v57 }
 0x133   :  { %v1149_v38 = vmul.f32 %v1148_v11, %v1146_v55  ;;  %v1272_v28 = vadd.s32 %v1270_v10, %v1268_v44  ;;  %v1152_v51 = vsub.s32 4, %v2303_v47  ;;  %v1221_v63 = vsel %vm1215_vm9, %v1218_v8, %v1220_v33 }
 0x134   :  { %v1251_v26 = vadd.s32 %v1250_v3, %v1240_v30  ;;  %v1275_v34 = vmul.u32 %v2326_v15, %v1221_v63  ;;  %vm1171_vm8 = vweird.f32 %v1555_v40  ;;  %vm1184_vm10 = vcmp.lt.s32.totalorder %v1557_v41, 0 }
 0x135   :  { %v1150_v29 = vxor.u32 2147483648, %v1149_v38  ;;  %v1273_v9 = vadd.s32 %v1272_v28, %v1262_v54  ;;  %v1153_v48 = vsel %vm1030_vm13, %v1152_v51, %v2303_v47  ;;  %vm2394_vm11 = vcmp.le.f32.partialorder %v1182_v56, 0.7853982 }
 0x136   :  { %v1252_v1 = vadd.s32 %v1251_v26, %v1242_v43  ;;  %v1155_v4 = vsel %vm2365_vm1, 0, %v1153_v48  ;;  %vm1325_vm15 = vweird.f32 %v1557_v41 }
 0x137   :  { %v1151_v42 = vsel %vm1030_vm13, %v1150_v29, %v1149_v38  ;;  %v1274_v24 = vadd.s32 %v1273_v9, %v1264_v31  ;;  %v1172_v53 = vand.u32 3, %v1155_v4 }
 0x138   :  { %v1154_v58 = vsel %vm2365_vm1, %v1555_v40, %v1151_v42  ;;  %vm1277_vm3 = vc.u32 %v1252_v1, %v1271_v21  ;;  %v1276_v25 = vadd.s32 %v1271_v21, %v1252_v1 }
 0x139   :  { %v1156_v14 = vmul.f32 %v1154_v58, %v1154_v58  ;;  %v1278_v46 = vadd.s32 1, %v1274_v24  ;;  %vm1177_vm4 = vcmp.eq.s32.totalorder %v1172_v53, 2  ;;  %vm1173_vm5 = vcmp.lt.s32.totalorder %v1172_v53, 2 }
 0x13a   :  { %vm1174_vm6 = vcmp.eq.s32.totalorder %v1172_v53, 0 }
 0x13b   :  { %v1157_v32 = vmul.f32 -0.001358992, %v1156_v14  ;;  %v1164_v23 = vmul.f32 -0.00019511016, %v1156_v14  ;;  %v1279_v16 = vsel %vm1277_vm3, %v1278_v46, %v1274_v24 }
 0x13c   :  { %v1280_v22 = vadd.s32 %v1279_v16, %v1275_v34 }
 0x13d   :  { %v1158_v59 = vadd.f32 0.041655596, %v1157_v32  ;;  %v1165_v37 = vadd.f32 0.008332121, %v1164_v23 }
 0x13e   :  { %v1281_v18 = vadd.s32 536870912, %v1280_v22 }
 0x13f   :  { %v1159_v13 = vmul.f32 %v1158_v59, %v1156_v14  ;;  %v1166_v35 = vmul.f32 %v1165_v37, %v1156_v14 }
 0x140   :  { %v1282_v36 = vshrl.u32 %v1281_v18, 30 }
 0x141   :  { %v1160_v19 = vadd.f32 -0.4999988, %v1159_v13  ;;  %v1167_v5 = vadd.f32 -0.16666654, %v1166_v35 }
 0x142   :  { %v1283_v47 = vshll.u32 %v1282_v36, 30  ;;  %v1306_v10 = vsub.s32 4, %v1282_v36 }
 0x143   :  { %v1161_v15 = vmul.f32 %v1160_v19, %v1156_v14  ;;  %v1168_v7 = vmul.f32 %v1167_v5, %v1156_v14 }
 0x144   :  { %v1284_v2 = vsub.s32 %v1280_v22, %v1283_v47  ;;  %v1307_v21 = vsel %vm1184_vm10, %v1306_v10, %v1282_v36 }
 0x145   :  { %v1162_v52 = vadd.f32 1.0, %v1161_v15  ;;  %v1169_v17 = vadd.f32 1.0, %v1168_v7  ;;  %v1309_v63 = vsel %vm2394_vm11, 0, %v1307_v21 }
 0x146   :  { %vm1285_vm7 = vcmp.lt.s32.totalorder %v1284_v2, 0  ;;  %v1286_v11 = vsub.s32 0, %v1284_v2  ;;  %v1326_v32 = vand.u32 3, %v1309_v63 }
 0x147   :  { %v1170_v61 = vmul.f32 %v1169_v17, %v1154_v58  ;;  %v1178_v49 = vxor.u32 2147483648, %v1162_v52 }
 0x148   :  { %v1287_v60 = vsel %vm1285_vm7, %v1286_v11, %v1284_v2  ;;  %vm1331_vm12 = vcmp.eq.s32.totalorder %v1326_v32, 2  ;;  %vm1328_vm13 = vcmp.eq.s32.totalorder %v1326_v32, 0  ;;  %vm1327_vm14 = vcmp.lt.s32.totalorder %v1326_v32, 2 }
 0x149   :  { %v1175_v0 = vxor.u32 2147483648, %v1170_v61  ;;  %v1179_v39 = vsel %vm1177_vm4, %v1178_v49, %v1170_v61  ;;  %v1288_v20 = vclz %v1287_v60 }
 0x14b   :  { %v1176_v45 = vsel %vm1174_vm6, %v1162_v52, %v1175_v0  ;;  %v1388_v55 = vadd.s32 4294967294, %v1288_v20 }
 0x14c   :  { %v1180_v30 = vsel %vm1173_vm5, %v1176_v45, %v1179_v39 }
 0x14d   :  { %v1181_v57 = vsel %vm1171_vm8, nan, %v1180_v30  ;;  %vm1389_vm9 = vcmp.lt.s32.totalorder %v1388_v55, 0 }
 0x14e   :  { %1342 = vst [vmem:[#allocation9 + $0x30] sm:$0xff] %v1181_v57  ;;  %v1291_v12 = vsel %vm1389_vm9, 0, %v1388_v55 }
 0x14f   :  { %v1292_v62 = vsub.s32 32, %v1291_v12  ;;  %v1293_v6 = vshll.u32 %v1284_v2, %v1291_v12  ;;  %v1296_v50 = vsub.s32 4294967266, %v1291_v12 }
 0x151   :  { %v1294_v38 = vshrl.u32 %v1276_v25, %v1292_v62  ;;  %v1297_v43 = vadd.s32 127, %v1296_v50 }
 0x153   :  { %v1295_v3 = vor.u32 %v1294_v38, %v1293_v6  ;;  %v1298_v44 = vshll.u32 %v1297_v43, 23 }
 0x155   :  { %v1299_v27 = vor.u32 4788187, %v1298_v44  ;;  %v1302_v8 = vcvt.s32.f32 %v1295_v3 }
 0x157   :  { %v1300_v40 = vand.u32 2147483647, %v1299_v27 }
 0x159   :  { %v1303_v54 = vmul.f32 %v1302_v8, %v1300_v40 }
 0x15b   :  { %v1304_v33 = vxor.u32 2147483648, %v1303_v54 }
 0x15d   :  { %v1305_v26 = vsel %vm1184_vm10, %v1304_v33, %v1303_v54 }
 0x15e   :  { %v1308_v31 = vsel %vm2394_vm11, %v1557_v41, %v1305_v26 }
 0x15f   :  { %v1310_v28 = vmul.f32 %v1308_v31, %v1308_v31 }
 0x161   :  { %v1311_v42 = vmul.f32 -0.001358992, %v1310_v28  ;;  %v1318_v1 = vmul.f32 -0.00019511016, %v1310_v28 }
 0x163   :  { %v1312_v51 = vadd.f32 0.041655596, %v1311_v42  ;;  %v1319_v58 = vadd.f32 0.008332121, %v1318_v1 }
 0x165   :  { %v1313_v56 = vmul.f32 %v1312_v51, %v1310_v28  ;;  %v1320_v9 = vmul.f32 %v1319_v58, %v1310_v28 }
 0x167   :  { %v1314_v14 = vadd.f32 -0.4999988, %v1313_v56  ;;  %v1321_v24 = vadd.f32 -0.16666654, %v1320_v9 }
 0x169   :  { %v1315_v23 = vmul.f32 %v1314_v14, %v1310_v28  ;;  %v1322_v34 = vmul.f32 %v1321_v24, %v1310_v28 }
 0x16b   :  { %v1316_v48 = vadd.f32 1.0, %v1315_v23  ;;  %v1323_v46 = vadd.f32 1.0, %v1322_v34 }
 0x16d   :  { %v1324_v59 = vmul.f32 %v1323_v46, %v1308_v31  ;;  %v1332_v37 = vxor.u32 2147483648, %v1316_v48 }
 0x16f   :  { %v1329_v16 = vxor.u32 2147483648, %v1324_v59  ;;  %v1333_v4 = vsel %vm1331_vm12, %v1332_v37, %v1324_v59 }
 0x171   :  { %v1330_v13 = vsel %vm1328_vm13, %v1316_v48, %v1329_v16 }
 0x172   :  { %v1334_v35 = vsel %vm1327_vm14, %v1330_v13, %v1333_v4 }
 0x173   :  { %v1335_v22 = vsel %vm1325_vm15, nan, %v1334_v35 }
 0x174   :  { %1343 = vst [vmem:[#allocation9 + $0x38] sm:$0xff] %v1335_v22 }
 0x175   :  { %1356 = dma.vmem_to_hbm [thread:$0]  %s1349_s28, 1024, %s1351_s4, [#allocation4], %s1497_s21, %s1497_s21, %s1498_s22  }
 0x176   :  { %1493 = dma.done.wait [#allocation4], 1024  }
 0x177   :  { %1494 = vsyncadd [#allocation4], 4294966272 }
 0x178   :  { %1361 = vsyncpa [#allocation3], 1 }
 0x179   :  { %1362 = vsyncpa [#allocation8], 1 }
 0x17a   :  { %1363 = vsyncpa [#allocation4], 1 }
 0x17b   :  { %1364 = vsyncpa [#allocation5], 1 }

</bundles_post_ra>
